<compile_context>
chip_gen: v7x
topology: tpu7x:2x2x1
jax: 0.10.0
libtpu: 0.0.40
codegen_flags: <defaults>
</compile_context>

<pallas_src>
import jax
import jax.numpy as jnp
from jax import lax
from jax.experimental import pallas as pl
from jax.experimental.pallas import tpu as pltpu


def _round_up(x, m):
    return ((x + m - 1) // m) * m


def _pick_time_chunk(T, target=16):
    tc = min(T, target)
    while T % tc != 0:
        tc -= 1
    return tc


def _bilstm_kernel(x_ref, wih_ref, whh_ref, b_ref,
                   out_ref, hn_ref, cn_ref,
                   gx_sc, h_sc, c_sc):
    """One grid step = (direction d, time-chunk c).

    x_ref:   [Tc, Bp, E]     current time chunk (already chunk-reversed for d==1)
    wih_ref: [E, 4Hp]        W_ih^T for direction d
    whh_ref: [Hp, 4Hp]       W_hh^T for direction d
    b_ref:   [1, 4Hp]        b_ih + b_hh for direction d
    out_ref: [Tc, Bp, Hp]    hidden states for this chunk (written at original t positions)
    hn_ref:  [Bp, Hp]        final hidden state for direction d
    cn_ref:  [Bp, Hp]        final cell state for direction d
    gx_sc:   [Tc, Bp, 4Hp]   hoisted input projection scratch
    h_sc, c_sc: [Bp, Hp]     recurrent state carried across time chunks
    """
    d = pl.program_id(0)
    c_idx = pl.program_id(1)
    nc = pl.num_programs(1)

    Tc, Bp, E = x_ref.shape
    Hp = h_sc.shape[1]

    @pl.when(c_idx == 0)
    def _():
        h_sc[...] = jnp.zeros_like(h_sc)
        c_sc[...] = jnp.zeros_like(c_sc)

    # ---- Hoisted input projection: one big MXU matmul per chunk (bias folded in). ----
    x_flat = x_ref[...].reshape(Tc * Bp, E)
    gx = jnp.dot(x_flat, wih_ref[...], preferred_element_type=jnp.float32) + b_ref[...]
    gx_sc[...] = gx.reshape(Tc, Bp, 4 * Hp)

    whh = whh_ref[...]                       # [Hp, 4Hp], hoisted load
    h0 = h_sc[...]
    c0 = c_sc[...]

    def step(t, carry):
        h, c = carry
        # forward (d==0): t_eff = t ; backward (d==1): t_eff = Tc-1-t  (in-kernel reversal)
        t_eff = d * (Tc - 1 - 2 * t) + t
        gates = gx_sc[t_eff] + jnp.dot(h, whh, preferred_element_type=jnp.float32)
        i_g = jax.nn.sigmoid(gates[:, 0 * Hp:1 * Hp])
        f_g = jax.nn.sigmoid(gates[:, 1 * Hp:2 * Hp])
        g_g = jnp.tanh(gates[:, 2 * Hp:3 * Hp])
        o_g = jax.nn.sigmoid(gates[:, 3 * Hp:4 * Hp])
        c_new = f_g * c + i_g * g_g
        h_new = o_g * jnp.tanh(c_new)
        out_ref[t_eff] = h_new               # already at original (un-reversed) position
        return (h_new, c_new)

    h_f, c_f = lax.fori_loop(0, Tc, step, (h0, c0), unroll=True)
    h_sc[...] = h_f
    c_sc[...] = c_f

    @pl.when(c_idx == nc - 1)
    def _():
        hn_ref[...] = h_f
        cn_ref[...] = c_f


def _pack_dir_weights(w_ih, w_hh, b_ih, b_hh, H, Hp):
    """PyTorch layout (w_ih [4H,E], w_hh [4H,H]) -> lane-padded, transposed kernel layout."""
    E = w_ih.shape[1]
    pad_h = Hp - H
    wih_p = jnp.pad(w_ih.reshape(4, H, E), ((0, 0), (0, pad_h), (0, 0))).reshape(4 * Hp, E)
    whh_p = jnp.pad(w_hh.reshape(4, H, H), ((0, 0), (0, pad_h), (0, pad_h))).reshape(4 * Hp, Hp)
    b_p = jnp.pad((b_ih + b_hh).reshape(4, H), ((0, 0), (0, pad_h))).reshape(1, 4 * Hp)
    return wih_p.T, whh_p.T, b_p             # [E,4Hp], [Hp,4Hp], [1,4Hp]


def bidirectional_lstm(x_tbe, params, hidden_size, *, time_chunk=16):
    """x_tbe: [T, B, E] f32 (time-major). Returns out [T,B,2H], h_n [2,B,H], c_n [2,B,H]."""
    T, B, E = x_tbe.shape
    H = hidden_size
    Bp = _round_up(B, 8)
    Hp = _round_up(H, 128)
    Tc = _pick_time_chunk(T, time_chunk)
    nc = T // Tc

    # Pad batch to full sublanes; padded rows are independent and sliced off afterwards.
    if Bp != B:
        x_tbe = jnp.pad(x_tbe, ((0, 0), (0, Bp - B), (0, 0)))

    wih_f, whh_f, b_f = _pack_dir_weights(params["w_ih_f"], params["w_hh_f"],
                                          params["b_ih_f"], params["b_hh_f"], H, Hp)
    wih_b, whh_b, b_b = _pack_dir_weights(params["w_ih_b"], params["w_hh_b"],
                                          params["b_ih_b"], params["b_hh_b"], H, Hp)
    wih = jnp.stack([wih_f, wih_b], axis=0)   # [2, E, 4Hp]
    whh = jnp.stack([whh_f, whh_b], axis=0)   # [2, Hp, 4Hp]
    bias = jnp.stack([b_f, b_b], axis=0)      # [2, 1, 4Hp]

    # chunk index: forward walks chunks 0..nc-1, backward walks nc-1..0
    def chunk_idx(d, c):
        return d * (nc - 1) + (1 - 2 * d) * c

    out_p, hn_p, cn_p = pl.pallas_call(
        _bilstm_kernel,
        out_shape=(jax.ShapeDtypeStruct((2, T, Bp, Hp), jnp.float32),
                   jax.ShapeDtypeStruct((2, Bp, Hp), jnp.float32),
                   jax.ShapeDtypeStruct((2, Bp, Hp), jnp.float32)),
        grid=(2, nc),
        in_specs=[
            pl.BlockSpec((Tc, Bp, E), lambda d, c: (chunk_idx(d, c), 0, 0)),
            pl.BlockSpec((None, E, 4 * Hp), lambda d, c: (d, 0, 0)),
            pl.BlockSpec((None, Hp, 4 * Hp), lambda d, c: (d, 0, 0)),
            pl.BlockSpec((None, 1, 4 * Hp), lambda d, c: (d, 0, 0)),
        ],
        out_specs=(
            pl.BlockSpec((None, Tc, Bp, Hp), lambda d, c: (d, chunk_idx(d, c), 0, 0)),
            pl.BlockSpec((None, Bp, Hp), lambda d, c: (d, 0, 0)),
            pl.BlockSpec((None, Bp, Hp), lambda d, c: (d, 0, 0)),
        ),
        scratch_shapes=[pltpu.VMEM((Tc, Bp, 4 * Hp), jnp.float32),
                        pltpu.VMEM((Bp, Hp), jnp.float32),
                        pltpu.VMEM((Bp, Hp), jnp.float32)],
        compiler_params=pltpu.CompilerParams(
            dimension_semantics=("parallel", "arbitrary")),
    )(x_tbe, wih, whh, bias)

    out = jnp.concatenate([out_p[0, :, :B, :H], out_p[1, :, :B, :H]], axis=-1)  # [T,B,2H]
    h_n = hn_p[:, :B, :H]
    c_n = cn_p[:, :B, :H]
    return out, h_n, c_n


def encoder_forward(params, x_ids, hidden_size, *, time_chunk=16):
    """Mirrors Encoder.forward: returns (output [B,T,2H], (h_n [2,B,H], c_n [2,B,H]))."""
    # Single gather directly into time-major order (no extra transpose pass over HBM).
    x_tbe = jnp.take(params["embedding"], x_ids.T, axis=0).astype(jnp.float32)  # [T, B, E]
    out, h_n, c_n = bidirectional_lstm(x_tbe, params, hidden_size, time_chunk=time_chunk)
    output = jnp.transpose(out, (1, 0, 2))                                      # [B, T, 2H]
    return output, (h_n, c_n)


# ----------------------------- pure-JAX reference ---------------------------------------

def _reference_lstm_dir(x_tbe, w_ih, w_hh, b_ih, b_hh):
    H = w_hh.shape[1]
    b = b_ih + b_hh

    def step(carry, x_t):
        h, c = carry
        gates = x_t @ w_ih.T + h @ w_hh.T + b
        i_g = jax.nn.sigmoid(gates[:, 0 * H:1 * H])
        f_g = jax.nn.sigmoid(gates[:, 1 * H:2 * H])
        g_g = jnp.tanh(gates[:, 2 * H:3 * H])
        o_g = jax.nn.sigmoid(gates[:, 3 * H:4 * H])
        c_new = f_g * c + i_g * g_g
        h_new = o_g * jnp.tanh(c_new)
        return (h_new, c_new), h_new

    B = x_tbe.shape[1]
    init = (jnp.zeros((B, H), jnp.float32), jnp.zeros((B, H), jnp.float32))
    (h_n, c_n), out = lax.scan(step, init, x_tbe)
    return out, h_n, c_n


def init_params(key, vocab_size, embed_size, hidden_size):
    ks = jax.random.split(key, 9)
    H = hidden_size
    bound = 1.0 / jnp.sqrt(jnp.float32(H))
    u = lambda k, shape: jax.random.uniform(k, shape, jnp.float32, -bound, bound)
    return {
        "embedding": jax.random.normal(ks[0], (vocab_size, embed_size), jnp.float32),
        "w_ih_f": u(ks[1], (4 * H, embed_size)),
        "w_hh_f": u(ks[2], (4 * H, H)),
        "b_ih_f": u(ks[3], (4 * H,)),
        "b_hh_f": u(ks[4], (4 * H,)),
        "w_ih_b": u(ks[5], (4 * H, embed_size)),
        "w_hh_b": u(ks[6], (4 * H, H)),
        "b_ih_b": u(ks[7], (4 * H,)),
        "b_hh_b": u(ks[8], (4 * H,)),
    }


if __name__ == "__main__":
    vocab_size, embed_size, hidden_size = 32, 16, 32
    B, T = 2, 8

    key = jax.random.PRNGKey(0)
    k_param, k_ids = jax.random.split(key)
    params = init_params(k_param, vocab_size, embed_size, hidden_size)
    x_ids = jax.random.randint(k_ids, (B, T), 0, vocab_size, dtype=jnp.int32)

    fwd = jax.jit(lambda p, ids: encoder_forward(p, ids, hidden_size))
    output, (h_n, c_n) = fwd(params, x_ids)
    jax.block_until_ready((output, h_n, c_n))

    assert output.shape == (B, T, 2 * hidden_size)
    assert h_n.shape == (2, B, hidden_size)
    assert c_n.shape == (2, B, hidden_size)

    # correctness check against a pure-JAX lax.scan reference
    emb = jnp.take(params["embedding"], x_ids, axis=0)
    x_tbe = jnp.transpose(emb, (1, 0, 2)).astype(jnp.float32)
    ref_f, ref_hf, ref_cf = _reference_lstm_dir(
        x_tbe, params["w_ih_f"], params["w_hh_f"], params["b_ih_f"], params["b_hh_f"])
    ref_b, ref_hb, ref_cb = _reference_lstm_dir(
        x_tbe[::-1], params["w_ih_b"], params["w_hh_b"], params["b_ih_b"], params["b_hh_b"])
    ref_out = jnp.transpose(jnp.concatenate([ref_f, ref_b[::-1]], axis=-1), (1, 0, 2))
    ref_hn = jnp.stack([ref_hf, ref_hb], axis=0)
    ref_cn = jnp.stack([ref_cf, ref_cb], axis=0)

    assert jnp.allclose(output, ref_out, atol=1e-5), "output mismatch"
    assert jnp.allclose(h_n, ref_hn, atol=1e-5), "h_n mismatch"
    assert jnp.allclose(c_n, ref_cn, atol=1e-5), "c_n mismatch"

    print("KERNEL_OK")
</pallas_src>

<mosaic_0001>
module attributes {stable_mosaic.version = 11 : i64} {
  func.func @_bilstm_kernel(%arg0: i32, %arg1: i32, %arg2: memref<8x8x16xf32, #tpu.memory_space<vmem>>, %arg3: memref<1x16x512xf32, #tpu.memory_space<vmem>>, %arg4: memref<1x128x512xf32, #tpu.memory_space<vmem>>, %arg5: memref<1x1x512xf32, #tpu.memory_space<vmem>>, %arg6: memref<1x8x8x128xf32, #tpu.memory_space<vmem>>, %arg7: memref<1x8x128xf32, #tpu.memory_space<vmem>>, %arg8: memref<1x8x128xf32, #tpu.memory_space<vmem>>, %arg9: memref<8x8x512xf32, #tpu.memory_space<vmem>>, %arg10: memref<8x128xf32, #tpu.memory_space<vmem>>, %arg11: memref<8x128xf32, #tpu.memory_space<vmem>>) attributes {dimension_semantics = [#tpu.dimension_semantics<parallel>, #tpu.dimension_semantics<arbitrary>], iteration_bounds = array<i64: 2, 1>, scalar_prefetch = 0 : i64, scratch_operands = 3 : i64, tpu.core_type = #tpu.core_type<tc>, window_params = [{transform_indices = @transform_0, window_bounds = array<i64: 8, 8, 16>}, {transform_indices = @transform_1, window_bounds = array<i64: 1, 16, 512>}, {transform_indices = @transform_2, window_bounds = array<i64: 1, 128, 512>}, {transform_indices = @transform_3, window_bounds = array<i64: 1, 1, 512>}, {transform_indices = @transform_4, window_bounds = array<i64: 1, 8, 8, 128>}, {transform_indices = @transform_5, window_bounds = array<i64: 1, 8, 128>}, {transform_indices = @transform_6, window_bounds = array<i64: 1, 8, 128>}]} {
    %c0_i32 = arith.constant 0 : i32
    %0 = arith.cmpi eq, %arg1, %c0_i32 : i32
    %1 = arith.extui %0 : i1 to i32
    %c0_i32_0 = arith.constant 0 : i32
    %2 = arith.cmpi ne, %1, %c0_i32_0 : i32
    scf.if %2 {
      %cst_114 = arith.constant 0.000000e+00 : f32
      %327 = vector.broadcast %cst_114 : f32 to vector<8x128xf32>
      %c0_115 = arith.constant 0 : index
      %c0_116 = arith.constant 0 : index
      %328 = vector.load %arg10[%c0_115, %c0_116] : memref<8x128xf32, #tpu.memory_space<vmem>>, vector<8x128xf32>
      tpu.vector_store %arg10[%c0_115, %c0_116], %327 {strides = array<i32>} : memref<8x128xf32, #tpu.memory_space<vmem>>, vector<8x128xf32>,
      %cst_117 = arith.constant 0.000000e+00 : f32
      %329 = vector.broadcast %cst_117 : f32 to vector<8x128xf32>
      %c0_118 = arith.constant 0 : index
      %c0_119 = arith.constant 0 : index
      %330 = vector.load %arg11[%c0_118, %c0_119] : memref<8x128xf32, #tpu.memory_space<vmem>>, vector<8x128xf32>
      tpu.vector_store %arg11[%c0_118, %c0_119], %329 {strides = array<i32>} : memref<8x128xf32, #tpu.memory_space<vmem>>, vector<8x128xf32>,
    } else {
    }
    %c0 = arith.constant 0 : index
    %c0_1 = arith.constant 0 : index
    %c0_2 = arith.constant 0 : index
    %3 = vector.load %arg2[%c0, %c0_1, %c0_2] : memref<8x8x16xf32, #tpu.memory_space<vmem>>, vector<8x8x16xf32>
    %4 = vector.shape_cast %3 : vector<8x8x16xf32> to vector<64x16xf32>
    %c0_3 = arith.constant 0 : index
    %c0_4 = arith.constant 0 : index
    %c0_5 = arith.constant 0 : index
    %5 = vector.load %arg3[%c0_3, %c0_4, %c0_5] : memref<1x16x512xf32, #tpu.memory_space<vmem>>, vector<1x16x512xf32>
    %6 = vector.shape_cast %5 : vector<1x16x512xf32> to vector<16x512xf32>
    %cst = arith.constant dense<0.000000e+00> : vector<64x512xf32>
    %7 = tpu.matmul %4, %6, %cst {dimension_numbers = #tpu.dot_dimension_numbers<[1], [0], [0], [1], [0, 0, 1, 1], [], []>} : vector<64x16xf32>, vector<16x512xf32>, vector<64x512xf32> -> vector<64x512xf32>
    %c0_6 = arith.constant 0 : index
    %c0_7 = arith.constant 0 : index
    %c0_8 = arith.constant 0 : index
    %8 = vector.load %arg5[%c0_6, %c0_7, %c0_8] : memref<1x1x512xf32, #tpu.memory_space<vmem>>, vector<1x1x512xf32>
    %9 = vector.shape_cast %8 : vector<1x1x512xf32> to vector<1x512xf32>
    %10 = vector.broadcast %9 : vector<1x512xf32> to vector<64x512xf32>
    %11 = arith.addf %7, %10 : vector<64x512xf32>
    %12 = vector.shape_cast %11 : vector<64x512xf32> to vector<8x8x512xf32>
    %c0_9 = arith.constant 0 : index
    %c0_10 = arith.constant 0 : index
    %c0_11 = arith.constant 0 : index
    %13 = vector.load %arg9[%c0_9, %c0_10, %c0_11] : memref<8x8x512xf32, #tpu.memory_space<vmem>>, vector<8x8x512xf32>
    tpu.vector_store %arg9[%c0_9, %c0_10, %c0_11], %12 {strides = array<i32>} : memref<8x8x512xf32, #tpu.memory_space<vmem>>, vector<8x8x512xf32>,
    %c0_12 = arith.constant 0 : index
    %c0_13 = arith.constant 0 : index
    %c0_14 = arith.constant 0 : index
    %14 = vector.load %arg4[%c0_12, %c0_13, %c0_14] : memref<1x128x512xf32, #tpu.memory_space<vmem>>, vector<1x128x512xf32>
    %15 = vector.shape_cast %14 : vector<1x128x512xf32> to vector<128x512xf32>
    %c0_15 = arith.constant 0 : index
    %c0_16 = arith.constant 0 : index
    %16 = vector.load %arg10[%c0_15, %c0_16] : memref<8x128xf32, #tpu.memory_space<vmem>>, vector<8x128xf32>
    %c0_17 = arith.constant 0 : index
    %c0_18 = arith.constant 0 : index
    %17 = vector.load %arg11[%c0_17, %c0_18] : memref<8x128xf32, #tpu.memory_space<vmem>>, vector<8x128xf32>
    %c0_i32_19 = arith.constant 0 : i32
    %c2_i32 = arith.constant 2 : i32
    %18 = arith.muli %c2_i32, %c0_i32_19 : i32
    %c7_i32 = arith.constant 7 : i32
    %19 = arith.subi %c7_i32, %18 : i32
    %20 = arith.muli %arg0, %19 : i32
    %21 = arith.addi %20, %c0_i32_19 : i32
    %22 = arith.index_cast %21 : i32 to index
    %c0_20 = arith.constant 0 : index
    %c0_21 = arith.constant 0 : index
    %23 = vector.load %arg9[%22, %c0_20, %c0_21] : memref<8x8x512xf32, #tpu.memory_space<vmem>>, vector<1x8x512xf32>
    %24 = vector.shape_cast %23 : vector<1x8x512xf32> to vector<8x512xf32>
    %cst_22 = arith.constant dense<0.000000e+00> : vector<8x512xf32>
    %25 = tpu.matmul %16, %15, %cst_22 {dimension_numbers = #tpu.dot_dimension_numbers<[1], [0], [0], [1], [0, 0, 1, 1], [], []>} : vector<8x128xf32>, vector<128x512xf32>, vector<8x512xf32> -> vector<8x512xf32>
    %26 = arith.addf %24, %25 : vector<8x512xf32>
    %27 = vector.extract_strided_slice %26 {offsets = [0, 0], sizes = [8, 128], strides = [1, 1]} : vector<8x512xf32> to vector<8x128xf32>
    %28 = arith.negf %27 : vector<8x128xf32>
    %29 = math.exp %28 : vector<8x128xf32>
    %cst_23 = arith.constant 1.000000e+00 : f32
    %30 = vector.broadcast %cst_23 : f32 to vector<8x128xf32>
    %31 = arith.addf %30, %29 : vector<8x128xf32>
    %32 = arith.divf %30, %31 : vector<8x128xf32>
    %33 = vector.extract_strided_slice %26 {offsets = [0, 128], sizes = [8, 128], strides = [1, 1]} : vector<8x512xf32> to vector<8x128xf32>
    %34 = arith.negf %33 : vector<8x128xf32>
    %35 = math.exp %34 : vector<8x128xf32>
    %cst_24 = arith.constant 1.000000e+00 : f32
    %36 = vector.broadcast %cst_24 : f32 to vector<8x128xf32>
    %37 = arith.addf %36, %35 : vector<8x128xf32>
    %38 = arith.divf %36, %37 : vector<8x128xf32>
    %39 = vector.extract_strided_slice %26 {offsets = [0, 256], sizes = [8, 128], strides = [1, 1]} : vector<8x512xf32> to vector<8x128xf32>
    %40 = math.tanh %39 : vector<8x128xf32>
    %41 = vector.extract_strided_slice %26 {offsets = [0, 384], sizes = [8, 128], strides = [1, 1]} : vector<8x512xf32> to vector<8x128xf32>
    %42 = arith.negf %41 : vector<8x128xf32>
    %43 = math.exp %42 : vector<8x128xf32>
    %cst_25 = arith.constant 1.000000e+00 : f32
    %44 = vector.broadcast %cst_25 : f32 to vector<8x128xf32>
    %45 = arith.addf %44, %43 : vector<8x128xf32>
    %46 = arith.divf %44, %45 : vector<8x128xf32>
    %47 = arith.mulf %38, %17 : vector<8x128xf32>
    %48 = arith.mulf %32, %40 : vector<8x128xf32>
    %49 = arith.addf %47, %48 : vector<8x128xf32>
    %50 = math.tanh %49 : vector<8x128xf32>
    %51 = arith.mulf %46, %50 : vector<8x128xf32>
    %c0_26 = arith.constant 0 : index
    %52 = arith.index_cast %21 : i32 to index
    %c0_27 = arith.constant 0 : index
    %c0_28 = arith.constant 0 : index
    %53 = vector.load %arg6[%c0_26, %52, %c0_27, %c0_28] : memref<1x8x8x128xf32, #tpu.memory_space<vmem>>, vector<1x1x8x128xf32>
    %54 = vector.shape_cast %53 : vector<1x1x8x128xf32> to vector<8x128xf32>
    %55 = vector.shape_cast %51 : vector<8x128xf32> to vector<1x1x8x128xf32>
    tpu.vector_store %arg6[%c0_26, %52, %c0_27, %c0_28], %55 {strides = array<i32>} : memref<1x8x8x128xf32, #tpu.memory_space<vmem>>, vector<1x1x8x128xf32>,
    %c1_i32 = arith.constant 1 : i32
    %c2_i32_29 = arith.constant 2 : i32
    %56 = arith.muli %c2_i32_29, %c1_i32 : i32
    %c7_i32_30 = arith.constant 7 : i32
    %57 = arith.subi %c7_i32_30, %56 : i32
    %58 = arith.muli %arg0, %57 : i32
    %59 = arith.addi %58, %c1_i32 : i32
    %60 = arith.index_cast %59 : i32 to index
    %c0_31 = arith.constant 0 : index
    %c0_32 = arith.constant 0 : index
    %61 = vector.load %arg9[%60, %c0_31, %c0_32] : memref<8x8x512xf32, #tpu.memory_space<vmem>>, vector<1x8x512xf32>
    %62 = vector.shape_cast %61 : vector<1x8x512xf32> to vector<8x512xf32>
    %cst_33 = arith.constant dense<0.000000e+00> : vector<8x512xf32>
    %63 = tpu.matmul %51, %15, %cst_33 {dimension_numbers = #tpu.dot_dimension_numbers<[1], [0], [0], [1], [0, 0, 1, 1], [], []>} : vector<8x128xf32>, vector<128x512xf32>, vector<8x512xf32> -> vector<8x512xf32>
    %64 = arith.addf %62, %63 : vector<8x512xf32>
    %65 = vector.extract_strided_slice %64 {offsets = [0, 0], sizes = [8, 128], strides = [1, 1]} : vector<8x512xf32> to vector<8x128xf32>
    %66 = arith.negf %65 : vector<8x128xf32>
    %67 = math.exp %66 : vector<8x128xf32>
    %cst_34 = arith.constant 1.000000e+00 : f32
    %68 = vector.broadcast %cst_34 : f32 to vector<8x128xf32>
    %69 = arith.addf %68, %67 : vector<8x128xf32>
    %70 = arith.divf %68, %69 : vector<8x128xf32>
    %71 = vector.extract_strided_slice %64 {offsets = [0, 128], sizes = [8, 128], strides = [1, 1]} : vector<8x512xf32> to vector<8x128xf32>
    %72 = arith.negf %71 : vector<8x128xf32>
    %73 = math.exp %72 : vector<8x128xf32>
    %cst_35 = arith.constant 1.000000e+00 : f32
    %74 = vector.broadcast %cst_35 : f32 to vector<8x128xf32>
    %75 = arith.addf %74, %73 : vector<8x128xf32>
    %76 = arith.divf %74, %75 : vector<8x128xf32>
    %77 = vector.extract_strided_slice %64 {offsets = [0, 256], sizes = [8, 128], strides = [1, 1]} : vector<8x512xf32> to vector<8x128xf32>
    %78 = math.tanh %77 : vector<8x128xf32>
    %79 = vector.extract_strided_slice %64 {offsets = [0, 384], sizes = [8, 128], strides = [1, 1]} : vector<8x512xf32> to vector<8x128xf32>
    %80 = arith.negf %79 : vector<8x128xf32>
    %81 = math.exp %80 : vector<8x128xf32>
    %cst_36 = arith.constant 1.000000e+00 : f32
    %82 = vector.broadcast %cst_36 : f32 to vector<8x128xf32>
    %83 = arith.addf %82, %81 : vector<8x128xf32>
    %84 = arith.divf %82, %83 : vector<8x128xf32>
    %85 = arith.mulf %76, %49 : vector<8x128xf32>
    %86 = arith.mulf %70, %78 : vector<8x128xf32>
    %87 = arith.addf %85, %86 : vector<8x128xf32>
    %88 = math.tanh %87 : vector<8x128xf32>
    %89 = arith.mulf %84, %88 : vector<8x128xf32>
    %c0_37 = arith.constant 0 : index
    %90 = arith.index_cast %59 : i32 to index
    %c0_38 = arith.constant 0 : index
    %c0_39 = arith.constant 0 : index
    %91 = vector.load %arg6[%c0_37, %90, %c0_38, %c0_39] : memref<1x8x8x128xf32, #tpu.memory_space<vmem>>, vector<1x1x8x128xf32>
    %92 = vector.shape_cast %91 : vector<1x1x8x128xf32> to vector<8x128xf32>
    %93 = vector.shape_cast %89 : vector<8x128xf32> to vector<1x1x8x128xf32>
    tpu.vector_store %arg6[%c0_37, %90, %c0_38, %c0_39], %93 {strides = array<i32>} : memref<1x8x8x128xf32, #tpu.memory_space<vmem>>, vector<1x1x8x128xf32>,
    %c2_i32_40 = arith.constant 2 : i32
    %c2_i32_41 = arith.constant 2 : i32
    %94 = arith.muli %c2_i32_41, %c2_i32_40 : i32
    %c7_i32_42 = arith.constant 7 : i32
    %95 = arith.subi %c7_i32_42, %94 : i32
    %96 = arith.muli %arg0, %95 : i32
    %97 = arith.addi %96, %c2_i32_40 : i32
    %98 = arith.index_cast %97 : i32 to index
    %c0_43 = arith.constant 0 : index
    %c0_44 = arith.constant 0 : index
    %99 = vector.load %arg9[%98, %c0_43, %c0_44] : memref<8x8x512xf32, #tpu.memory_space<vmem>>, vector<1x8x512xf32>
    %100 = vector.shape_cast %99 : vector<1x8x512xf32> to vector<8x512xf32>
    %cst_45 = arith.constant dense<0.000000e+00> : vector<8x512xf32>
    %101 = tpu.matmul %89, %15, %cst_45 {dimension_numbers = #tpu.dot_dimension_numbers<[1], [0], [0], [1], [0, 0, 1, 1], [], []>} : vector<8x128xf32>, vector<128x512xf32>, vector<8x512xf32> -> vector<8x512xf32>
    %102 = arith.addf %100, %101 : vector<8x512xf32>
    %103 = vector.extract_strided_slice %102 {offsets = [0, 0], sizes = [8, 128], strides = [1, 1]} : vector<8x512xf32> to vector<8x128xf32>
    %104 = arith.negf %103 : vector<8x128xf32>
    %105 = math.exp %104 : vector<8x128xf32>
    %cst_46 = arith.constant 1.000000e+00 : f32
    %106 = vector.broadcast %cst_46 : f32 to vector<8x128xf32>
    %107 = arith.addf %106, %105 : vector<8x128xf32>
    %108 = arith.divf %106, %107 : vector<8x128xf32>
    %109 = vector.extract_strided_slice %102 {offsets = [0, 128], sizes = [8, 128], strides = [1, 1]} : vector<8x512xf32> to vector<8x128xf32>
    %110 = arith.negf %109 : vector<8x128xf32>
    %111 = math.exp %110 : vector<8x128xf32>
    %cst_47 = arith.constant 1.000000e+00 : f32
    %112 = vector.broadcast %cst_47 : f32 to vector<8x128xf32>
    %113 = arith.addf %112, %111 : vector<8x128xf32>
    %114 = arith.divf %112, %113 : vector<8x128xf32>
    %115 = vector.extract_strided_slice %102 {offsets = [0, 256], sizes = [8, 128], strides = [1, 1]} : vector<8x512xf32> to vector<8x128xf32>
    %116 = math.tanh %115 : vector<8x128xf32>
    %117 = vector.extract_strided_slice %102 {offsets = [0, 384], sizes = [8, 128], strides = [1, 1]} : vector<8x512xf32> to vector<8x128xf32>
    %118 = arith.negf %117 : vector<8x128xf32>
    %119 = math.exp %118 : vector<8x128xf32>
    %cst_48 = arith.constant 1.000000e+00 : f32
    %120 = vector.broadcast %cst_48 : f32 to vector<8x128xf32>
    %121 = arith.addf %120, %119 : vector<8x128xf32>
    %122 = arith.divf %120, %121 : vector<8x128xf32>
    %123 = arith.mulf %114, %87 : vector<8x128xf32>
    %124 = arith.mulf %108, %116 : vector<8x128xf32>
    %125 = arith.addf %123, %124 : vector<8x128xf32>
    %126 = math.tanh %125 : vector<8x128xf32>
    %127 = arith.mulf %122, %126 : vector<8x128xf32>
    %c0_49 = arith.constant 0 : index
    %128 = arith.index_cast %97 : i32 to index
    %c0_50 = arith.constant 0 : index
    %c0_51 = arith.constant 0 : index
    %129 = vector.load %arg6[%c0_49, %128, %c0_50, %c0_51] : memref<1x8x8x128xf32, #tpu.memory_space<vmem>>, vector<1x1x8x128xf32>
    %130 = vector.shape_cast %129 : vector<1x1x8x128xf32> to vector<8x128xf32>
    %131 = vector.shape_cast %127 : vector<8x128xf32> to vector<1x1x8x128xf32>
    tpu.vector_store %arg6[%c0_49, %128, %c0_50, %c0_51], %131 {strides = array<i32>} : memref<1x8x8x128xf32, #tpu.memory_space<vmem>>, vector<1x1x8x128xf32>,
    %c3_i32 = arith.constant 3 : i32
    %c2_i32_52 = arith.constant 2 : i32
    %132 = arith.muli %c2_i32_52, %c3_i32 : i32
    %c7_i32_53 = arith.constant 7 : i32
    %133 = arith.subi %c7_i32_53, %132 : i32
    %134 = arith.muli %arg0, %133 : i32
    %135 = arith.addi %134, %c3_i32 : i32
    %136 = arith.index_cast %135 : i32 to index
    %c0_54 = arith.constant 0 : index
    %c0_55 = arith.constant 0 : index
    %137 = vector.load %arg9[%136, %c0_54, %c0_55] : memref<8x8x512xf32, #tpu.memory_space<vmem>>, vector<1x8x512xf32>
    %138 = vector.shape_cast %137 : vector<1x8x512xf32> to vector<8x512xf32>
    %cst_56 = arith.constant dense<0.000000e+00> : vector<8x512xf32>
    %139 = tpu.matmul %127, %15, %cst_56 {dimension_numbers = #tpu.dot_dimension_numbers<[1], [0], [0], [1], [0, 0, 1, 1], [], []>} : vector<8x128xf32>, vector<128x512xf32>, vector<8x512xf32> -> vector<8x512xf32>
    %140 = arith.addf %138, %139 : vector<8x512xf32>
    %141 = vector.extract_strided_slice %140 {offsets = [0, 0], sizes = [8, 128], strides = [1, 1]} : vector<8x512xf32> to vector<8x128xf32>
    %142 = arith.negf %141 : vector<8x128xf32>
    %143 = math.exp %142 : vector<8x128xf32>
    %cst_57 = arith.constant 1.000000e+00 : f32
    %144 = vector.broadcast %cst_57 : f32 to vector<8x128xf32>
    %145 = arith.addf %144, %143 : vector<8x128xf32>
    %146 = arith.divf %144, %145 : vector<8x128xf32>
    %147 = vector.extract_strided_slice %140 {offsets = [0, 128], sizes = [8, 128], strides = [1, 1]} : vector<8x512xf32> to vector<8x128xf32>
    %148 = arith.negf %147 : vector<8x128xf32>
    %149 = math.exp %148 : vector<8x128xf32>
    %cst_58 = arith.constant 1.000000e+00 : f32
    %150 = vector.broadcast %cst_58 : f32 to vector<8x128xf32>
    %151 = arith.addf %150, %149 : vector<8x128xf32>
    %152 = arith.divf %150, %151 : vector<8x128xf32>
    %153 = vector.extract_strided_slice %140 {offsets = [0, 256], sizes = [8, 128], strides = [1, 1]} : vector<8x512xf32> to vector<8x128xf32>
    %154 = math.tanh %153 : vector<8x128xf32>
    %155 = vector.extract_strided_slice %140 {offsets = [0, 384], sizes = [8, 128], strides = [1, 1]} : vector<8x512xf32> to vector<8x128xf32>
    %156 = arith.negf %155 : vector<8x128xf32>
    %157 = math.exp %156 : vector<8x128xf32>
    %cst_59 = arith.constant 1.000000e+00 : f32
    %158 = vector.broadcast %cst_59 : f32 to vector<8x128xf32>
    %159 = arith.addf %158, %157 : vector<8x128xf32>
    %160 = arith.divf %158, %159 : vector<8x128xf32>
    %161 = arith.mulf %152, %125 : vector<8x128xf32>
    %162 = arith.mulf %146, %154 : vector<8x128xf32>
    %163 = arith.addf %161, %162 : vector<8x128xf32>
    %164 = math.tanh %163 : vector<8x128xf32>
    %165 = arith.mulf %160, %164 : vector<8x128xf32>
    %c0_60 = arith.constant 0 : index
    %166 = arith.index_cast %135 : i32 to index
    %c0_61 = arith.constant 0 : index
    %c0_62 = arith.constant 0 : index
    %167 = vector.load %arg6[%c0_60, %166, %c0_61, %c0_62] : memref<1x8x8x128xf32, #tpu.memory_space<vmem>>, vector<1x1x8x128xf32>
    %168 = vector.shape_cast %167 : vector<1x1x8x128xf32> to vector<8x128xf32>
    %169 = vector.shape_cast %165 : vector<8x128xf32> to vector<1x1x8x128xf32>
    tpu.vector_store %arg6[%c0_60, %166, %c0_61, %c0_62], %169 {strides = array<i32>} : memref<1x8x8x128xf32, #tpu.memory_space<vmem>>, vector<1x1x8x128xf32>,
    %c4_i32 = arith.constant 4 : i32
    %c2_i32_63 = arith.constant 2 : i32
    %170 = arith.muli %c2_i32_63, %c4_i32 : i32
    %c7_i32_64 = arith.constant 7 : i32
    %171 = arith.subi %c7_i32_64, %170 : i32
    %172 = arith.muli %arg0, %171 : i32
    %173 = arith.addi %172, %c4_i32 : i32
    %174 = arith.index_cast %173 : i32 to index
    %c0_65 = arith.constant 0 : index
    %c0_66 = arith.constant 0 : index
    %175 = vector.load %arg9[%174, %c0_65, %c0_66] : memref<8x8x512xf32, #tpu.memory_space<vmem>>, vector<1x8x512xf32>
    %176 = vector.shape_cast %175 : vector<1x8x512xf32> to vector<8x512xf32>
    %cst_67 = arith.constant dense<0.000000e+00> : vector<8x512xf32>
    %177 = tpu.matmul %165, %15, %cst_67 {dimension_numbers = #tpu.dot_dimension_numbers<[1], [0], [0], [1], [0, 0, 1, 1], [], []>} : vector<8x128xf32>, vector<128x512xf32>, vector<8x512xf32> -> vector<8x512xf32>
    %178 = arith.addf %176, %177 : vector<8x512xf32>
    %179 = vector.extract_strided_slice %178 {offsets = [0, 0], sizes = [8, 128], strides = [1, 1]} : vector<8x512xf32> to vector<8x128xf32>
    %180 = arith.negf %179 : vector<8x128xf32>
    %181 = math.exp %180 : vector<8x128xf32>
    %cst_68 = arith.constant 1.000000e+00 : f32
    %182 = vector.broadcast %cst_68 : f32 to vector<8x128xf32>
    %183 = arith.addf %182, %181 : vector<8x128xf32>
    %184 = arith.divf %182, %183 : vector<8x128xf32>
    %185 = vector.extract_strided_slice %178 {offsets = [0, 128], sizes = [8, 128], strides = [1, 1]} : vector<8x512xf32> to vector<8x128xf32>
    %186 = arith.negf %185 : vector<8x128xf32>
    %187 = math.exp %186 : vector<8x128xf32>
    %cst_69 = arith.constant 1.000000e+00 : f32
    %188 = vector.broadcast %cst_69 : f32 to vector<8x128xf32>
    %189 = arith.addf %188, %187 : vector<8x128xf32>
    %190 = arith.divf %188, %189 : vector<8x128xf32>
    %191 = vector.extract_strided_slice %178 {offsets = [0, 256], sizes = [8, 128], strides = [1, 1]} : vector<8x512xf32> to vector<8x128xf32>
    %192 = math.tanh %191 : vector<8x128xf32>
    %193 = vector.extract_strided_slice %178 {offsets = [0, 384], sizes = [8, 128], strides = [1, 1]} : vector<8x512xf32> to vector<8x128xf32>
    %194 = arith.negf %193 : vector<8x128xf32>
    %195 = math.exp %194 : vector<8x128xf32>
    %cst_70 = arith.constant 1.000000e+00 : f32
    %196 = vector.broadcast %cst_70 : f32 to vector<8x128xf32>
    %197 = arith.addf %196, %195 : vector<8x128xf32>
    %198 = arith.divf %196, %197 : vector<8x128xf32>
    %199 = arith.mulf %190, %163 : vector<8x128xf32>
    %200 = arith.mulf %184, %192 : vector<8x128xf32>
    %201 = arith.addf %199, %200 : vector<8x128xf32>
    %202 = math.tanh %201 : vector<8x128xf32>
    %203 = arith.mulf %198, %202 : vector<8x128xf32>
    %c0_71 = arith.constant 0 : index
    %204 = arith.index_cast %173 : i32 to index
    %c0_72 = arith.constant 0 : index
    %c0_73 = arith.constant 0 : index
    %205 = vector.load %arg6[%c0_71, %204, %c0_72, %c0_73] : memref<1x8x8x128xf32, #tpu.memory_space<vmem>>, vector<1x1x8x128xf32>
    %206 = vector.shape_cast %205 : vector<1x1x8x128xf32> to vector<8x128xf32>
    %207 = vector.shape_cast %203 : vector<8x128xf32> to vector<1x1x8x128xf32>
    tpu.vector_store %arg6[%c0_71, %204, %c0_72, %c0_73], %207 {strides = array<i32>} : memref<1x8x8x128xf32, #tpu.memory_space<vmem>>, vector<1x1x8x128xf32>,
    %c5_i32 = arith.constant 5 : i32
    %c2_i32_74 = arith.constant 2 : i32
    %208 = arith.muli %c2_i32_74, %c5_i32 : i32
    %c7_i32_75 = arith.constant 7 : i32
    %209 = arith.subi %c7_i32_75, %208 : i32
    %210 = arith.muli %arg0, %209 : i32
    %211 = arith.addi %210, %c5_i32 : i32
    %212 = arith.index_cast %211 : i32 to index
    %c0_76 = arith.constant 0 : index
    %c0_77 = arith.constant 0 : index
    %213 = vector.load %arg9[%212, %c0_76, %c0_77] : memref<8x8x512xf32, #tpu.memory_space<vmem>>, vector<1x8x512xf32>
    %214 = vector.shape_cast %213 : vector<1x8x512xf32> to vector<8x512xf32>
    %cst_78 = arith.constant dense<0.000000e+00> : vector<8x512xf32>
    %215 = tpu.matmul %203, %15, %cst_78 {dimension_numbers = #tpu.dot_dimension_numbers<[1], [0], [0], [1], [0, 0, 1, 1], [], []>} : vector<8x128xf32>, vector<128x512xf32>, vector<8x512xf32> -> vector<8x512xf32>
    %216 = arith.addf %214, %215 : vector<8x512xf32>
    %217 = vector.extract_strided_slice %216 {offsets = [0, 0], sizes = [8, 128], strides = [1, 1]} : vector<8x512xf32> to vector<8x128xf32>
    %218 = arith.negf %217 : vector<8x128xf32>
    %219 = math.exp %218 : vector<8x128xf32>
    %cst_79 = arith.constant 1.000000e+00 : f32
    %220 = vector.broadcast %cst_79 : f32 to vector<8x128xf32>
    %221 = arith.addf %220, %219 : vector<8x128xf32>
    %222 = arith.divf %220, %221 : vector<8x128xf32>
    %223 = vector.extract_strided_slice %216 {offsets = [0, 128], sizes = [8, 128], strides = [1, 1]} : vector<8x512xf32> to vector<8x128xf32>
    %224 = arith.negf %223 : vector<8x128xf32>
    %225 = math.exp %224 : vector<8x128xf32>
    %cst_80 = arith.constant 1.000000e+00 : f32
    %226 = vector.broadcast %cst_80 : f32 to vector<8x128xf32>
    %227 = arith.addf %226, %225 : vector<8x128xf32>
    %228 = arith.divf %226, %227 : vector<8x128xf32>
    %229 = vector.extract_strided_slice %216 {offsets = [0, 256], sizes = [8, 128], strides = [1, 1]} : vector<8x512xf32> to vector<8x128xf32>
    %230 = math.tanh %229 : vector<8x128xf32>
    %231 = vector.extract_strided_slice %216 {offsets = [0, 384], sizes = [8, 128], strides = [1, 1]} : vector<8x512xf32> to vector<8x128xf32>
    %232 = arith.negf %231 : vector<8x128xf32>
    %233 = math.exp %232 : vector<8x128xf32>
    %cst_81 = arith.constant 1.000000e+00 : f32
    %234 = vector.broadcast %cst_81 : f32 to vector<8x128xf32>
    %235 = arith.addf %234, %233 : vector<8x128xf32>
    %236 = arith.divf %234, %235 : vector<8x128xf32>
    %237 = arith.mulf %228, %201 : vector<8x128xf32>
    %238 = arith.mulf %222, %230 : vector<8x128xf32>
    %239 = arith.addf %237, %238 : vector<8x128xf32>
    %240 = math.tanh %239 : vector<8x128xf32>
    %241 = arith.mulf %236, %240 : vector<8x128xf32>
    %c0_82 = arith.constant 0 : index
    %242 = arith.index_cast %211 : i32 to index
    %c0_83 = arith.constant 0 : index
    %c0_84 = arith.constant 0 : index
    %243 = vector.load %arg6[%c0_82, %242, %c0_83, %c0_84] : memref<1x8x8x128xf32, #tpu.memory_space<vmem>>, vector<1x1x8x128xf32>
    %244 = vector.shape_cast %243 : vector<1x1x8x128xf32> to vector<8x128xf32>
    %245 = vector.shape_cast %241 : vector<8x128xf32> to vector<1x1x8x128xf32>
    tpu.vector_store %arg6[%c0_82, %242, %c0_83, %c0_84], %245 {strides = array<i32>} : memref<1x8x8x128xf32, #tpu.memory_space<vmem>>, vector<1x1x8x128xf32>,
    %c6_i32 = arith.constant 6 : i32
    %c2_i32_85 = arith.constant 2 : i32
    %246 = arith.muli %c2_i32_85, %c6_i32 : i32
    %c7_i32_86 = arith.constant 7 : i32
    %247 = arith.subi %c7_i32_86, %246 : i32
    %248 = arith.muli %arg0, %247 : i32
    %249 = arith.addi %248, %c6_i32 : i32
    %250 = arith.index_cast %249 : i32 to index
    %c0_87 = arith.constant 0 : index
    %c0_88 = arith.constant 0 : index
    %251 = vector.load %arg9[%250, %c0_87, %c0_88] : memref<8x8x512xf32, #tpu.memory_space<vmem>>, vector<1x8x512xf32>
    %252 = vector.shape_cast %251 : vector<1x8x512xf32> to vector<8x512xf32>
    %cst_89 = arith.constant dense<0.000000e+00> : vector<8x512xf32>
    %253 = tpu.matmul %241, %15, %cst_89 {dimension_numbers = #tpu.dot_dimension_numbers<[1], [0], [0], [1], [0, 0, 1, 1], [], []>} : vector<8x128xf32>, vector<128x512xf32>, vector<8x512xf32> -> vector<8x512xf32>
    %254 = arith.addf %252, %253 : vector<8x512xf32>
    %255 = vector.extract_strided_slice %254 {offsets = [0, 0], sizes = [8, 128], strides = [1, 1]} : vector<8x512xf32> to vector<8x128xf32>
    %256 = arith.negf %255 : vector<8x128xf32>
    %257 = math.exp %256 : vector<8x128xf32>
    %cst_90 = arith.constant 1.000000e+00 : f32
    %258 = vector.broadcast %cst_90 : f32 to vector<8x128xf32>
    %259 = arith.addf %258, %257 : vector<8x128xf32>
    %260 = arith.divf %258, %259 : vector<8x128xf32>
    %261 = vector.extract_strided_slice %254 {offsets = [0, 128], sizes = [8, 128], strides = [1, 1]} : vector<8x512xf32> to vector<8x128xf32>
    %262 = arith.negf %261 : vector<8x128xf32>
    %263 = math.exp %262 : vector<8x128xf32>
    %cst_91 = arith.constant 1.000000e+00 : f32
    %264 = vector.broadcast %cst_91 : f32 to vector<8x128xf32>
    %265 = arith.addf %264, %263 : vector<8x128xf32>
    %266 = arith.divf %264, %265 : vector<8x128xf32>
    %267 = vector.extract_strided_slice %254 {offsets = [0, 256], sizes = [8, 128], strides = [1, 1]} : vector<8x512xf32> to vector<8x128xf32>
    %268 = math.tanh %267 : vector<8x128xf32>
    %269 = vector.extract_strided_slice %254 {offsets = [0, 384], sizes = [8, 128], strides = [1, 1]} : vector<8x512xf32> to vector<8x128xf32>
    %270 = arith.negf %269 : vector<8x128xf32>
    %271 = math.exp %270 : vector<8x128xf32>
    %cst_92 = arith.constant 1.000000e+00 : f32
    %272 = vector.broadcast %cst_92 : f32 to vector<8x128xf32>
    %273 = arith.addf %272, %271 : vector<8x128xf32>
    %274 = arith.divf %272, %273 : vector<8x128xf32>
    %275 = arith.mulf %266, %239 : vector<8x128xf32>
    %276 = arith.mulf %260, %268 : vector<8x128xf32>
    %277 = arith.addf %275, %276 : vector<8x128xf32>
    %278 = math.tanh %277 : vector<8x128xf32>
    %279 = arith.mulf %274, %278 : vector<8x128xf32>
    %c0_93 = arith.constant 0 : index
    %280 = arith.index_cast %249 : i32 to index
    %c0_94 = arith.constant 0 : index
    %c0_95 = arith.constant 0 : index
    %281 = vector.load %arg6[%c0_93, %280, %c0_94, %c0_95] : memref<1x8x8x128xf32, #tpu.memory_space<vmem>>, vector<1x1x8x128xf32>
    %282 = vector.shape_cast %281 : vector<1x1x8x128xf32> to vector<8x128xf32>
    %283 = vector.shape_cast %279 : vector<8x128xf32> to vector<1x1x8x128xf32>
    tpu.vector_store %arg6[%c0_93, %280, %c0_94, %c0_95], %283 {strides = array<i32>} : memref<1x8x8x128xf32, #tpu.memory_space<vmem>>, vector<1x1x8x128xf32>,
    %c7_i32_96 = arith.constant 7 : i32
    %c2_i32_97 = arith.constant 2 : i32
    %284 = arith.muli %c2_i32_97, %c7_i32_96 : i32
    %c7_i32_98 = arith.constant 7 : i32
    %285 = arith.subi %c7_i32_98, %284 : i32
    %286 = arith.muli %arg0, %285 : i32
    %287 = arith.addi %286, %c7_i32_96 : i32
    %288 = arith.index_cast %287 : i32 to index
    %c0_99 = arith.constant 0 : index
    %c0_100 = arith.constant 0 : index
    %289 = vector.load %arg9[%288, %c0_99, %c0_100] : memref<8x8x512xf32, #tpu.memory_space<vmem>>, vector<1x8x512xf32>
    %290 = vector.shape_cast %289 : vector<1x8x512xf32> to vector<8x512xf32>
    %cst_101 = arith.constant dense<0.000000e+00> : vector<8x512xf32>
    %291 = tpu.matmul %279, %15, %cst_101 {dimension_numbers = #tpu.dot_dimension_numbers<[1], [0], [0], [1], [0, 0, 1, 1], [], []>} : vector<8x128xf32>, vector<128x512xf32>, vector<8x512xf32> -> vector<8x512xf32>
    %292 = arith.addf %290, %291 : vector<8x512xf32>
    %293 = vector.extract_strided_slice %292 {offsets = [0, 0], sizes = [8, 128], strides = [1, 1]} : vector<8x512xf32> to vector<8x128xf32>
    %294 = arith.negf %293 : vector<8x128xf32>
    %295 = math.exp %294 : vector<8x128xf32>
    %cst_102 = arith.constant 1.000000e+00 : f32
    %296 = vector.broadcast %cst_102 : f32 to vector<8x128xf32>
    %297 = arith.addf %296, %295 : vector<8x128xf32>
    %298 = arith.divf %296, %297 : vector<8x128xf32>
    %299 = vector.extract_strided_slice %292 {offsets = [0, 128], sizes = [8, 128], strides = [1, 1]} : vector<8x512xf32> to vector<8x128xf32>
    %300 = arith.negf %299 : vector<8x128xf32>
    %301 = math.exp %300 : vector<8x128xf32>
    %cst_103 = arith.constant 1.000000e+00 : f32
    %302 = vector.broadcast %cst_103 : f32 to vector<8x128xf32>
    %303 = arith.addf %302, %301 : vector<8x128xf32>
    %304 = arith.divf %302, %303 : vector<8x128xf32>
    %305 = vector.extract_strided_slice %292 {offsets = [0, 256], sizes = [8, 128], strides = [1, 1]} : vector<8x512xf32> to vector<8x128xf32>
    %306 = math.tanh %305 : vector<8x128xf32>
    %307 = vector.extract_strided_slice %292 {offsets = [0, 384], sizes = [8, 128], strides = [1, 1]} : vector<8x512xf32> to vector<8x128xf32>
    %308 = arith.negf %307 : vector<8x128xf32>
    %309 = math.exp %308 : vector<8x128xf32>
    %cst_104 = arith.constant 1.000000e+00 : f32
    %310 = vector.broadcast %cst_104 : f32 to vector<8x128xf32>
    %311 = arith.addf %310, %309 : vector<8x128xf32>
    %312 = arith.divf %310, %311 : vector<8x128xf32>
    %313 = arith.mulf %304, %277 : vector<8x128xf32>
    %314 = arith.mulf %298, %306 : vector<8x128xf32>
    %315 = arith.addf %313, %314 : vector<8x128xf32>
    %316 = math.tanh %315 : vector<8x128xf32>
    %317 = arith.mulf %312, %316 : vector<8x128xf32>
    %c0_105 = arith.constant 0 : index
    %318 = arith.index_cast %287 : i32 to index
    %c0_106 = arith.constant 0 : index
    %c0_107 = arith.constant 0 : index
    %319 = vector.load %arg6[%c0_105, %318, %c0_106, %c0_107] : memref<1x8x8x128xf32, #tpu.memory_space<vmem>>, vector<1x1x8x128xf32>
    %320 = vector.shape_cast %319 : vector<1x1x8x128xf32> to vector<8x128xf32>
    %321 = vector.shape_cast %317 : vector<8x128xf32> to vector<1x1x8x128xf32>
    tpu.vector_store %arg6[%c0_105, %318, %c0_106, %c0_107], %321 {strides = array<i32>} : memref<1x8x8x128xf32, #tpu.memory_space<vmem>>, vector<1x1x8x128xf32>,
    %c8_i32 = arith.constant 8 : i32
    %c0_108 = arith.constant 0 : index
    %c0_109 = arith.constant 0 : index
    %322 = vector.load %arg10[%c0_108, %c0_109] : memref<8x128xf32, #tpu.memory_space<vmem>>, vector<8x128xf32>
    tpu.vector_store %arg10[%c0_108, %c0_109], %317 {strides = array<i32>} : memref<8x128xf32, #tpu.memory_space<vmem>>, vector<8x128xf32>,
    %c0_110 = arith.constant 0 : index
    %c0_111 = arith.constant 0 : index
    %323 = vector.load %arg11[%c0_110, %c0_111] : memref<8x128xf32, #tpu.memory_space<vmem>>, vector<8x128xf32>
    tpu.vector_store %arg11[%c0_110, %c0_111], %315 {strides = array<i32>} : memref<8x128xf32, #tpu.memory_space<vmem>>, vector<8x128xf32>,
    %c0_i32_112 = arith.constant 0 : i32
    %324 = arith.cmpi eq, %arg1, %c0_i32_112 : i32
    %325 = arith.extui %324 : i1 to i32
    %c0_i32_113 = arith.constant 0 : i32
    %326 = arith.cmpi ne, %325, %c0_i32_113 : i32
    scf.if %326 {
      %c0_114 = arith.constant 0 : index
      %c0_115 = arith.constant 0 : index
      %c0_116 = arith.constant 0 : index
      %327 = vector.load %arg7[%c0_114, %c0_115, %c0_116] : memref<1x8x128xf32, #tpu.memory_space<vmem>>, vector<1x8x128xf32>
      %328 = vector.shape_cast %327 : vector<1x8x128xf32> to vector<8x128xf32>
      %329 = vector.shape_cast %317 : vector<8x128xf32> to vector<1x8x128xf32>
      tpu.vector_store %arg7[%c0_114, %c0_115, %c0_116], %329 {strides = array<i32>} : memref<1x8x128xf32, #tpu.memory_space<vmem>>, vector<1x8x128xf32>,
      %c0_117 = arith.constant 0 : index
      %c0_118 = arith.constant 0 : index
      %c0_119 = arith.constant 0 : index
      %330 = vector.load %arg8[%c0_117, %c0_118, %c0_119] : memref<1x8x128xf32, #tpu.memory_space<vmem>>, vector<1x8x128xf32>
      %331 = vector.shape_cast %330 : vector<1x8x128xf32> to vector<8x128xf32>
      %332 = vector.shape_cast %315 : vector<8x128xf32> to vector<1x8x128xf32>
      tpu.vector_store %arg8[%c0_117, %c0_118, %c0_119], %332 {strides = array<i32>} : memref<1x8x128xf32, #tpu.memory_space<vmem>>, vector<1x8x128xf32>,
    } else {
    }
    return
  }
  func.func @transform_0(%arg0: i32, %arg1: i32) -> (i32, i32, i32) {
    %c0_i32 = arith.constant 0 : i32
    %0 = arith.muli %arg0, %c0_i32 : i32
    %c2_i32 = arith.constant 2 : i32
    %1 = arith.muli %c2_i32, %arg0 : i32
    %c1_i32 = arith.constant 1 : i32
    %2 = arith.subi %c1_i32, %1 : i32
    %3 = arith.muli %2, %arg1 : i32
    %4 = arith.addi %0, %3 : i32
    %c0_i32_0 = arith.constant 0 : i32
    %c0_i32_1 = arith.constant 0 : i32
    %c0_i32_2 = arith.constant 0 : i32
    return %4, %c0_i32_0, %c0_i32_1 : i32, i32, i32
  }
  func.func @transform_1(%arg0: i32, %arg1: i32) -> (i32, i32, i32) {
    %c0_i32 = arith.constant 0 : i32
    %c0_i32_0 = arith.constant 0 : i32
    %c0_i32_1 = arith.constant 0 : i32
    return %arg0, %c0_i32, %c0_i32_0 : i32, i32, i32
  }
  func.func @transform_2(%arg0: i32, %arg1: i32) -> (i32, i32, i32) {
    %c0_i32 = arith.constant 0 : i32
    %c0_i32_0 = arith.constant 0 : i32
    %c0_i32_1 = arith.constant 0 : i32
    return %arg0, %c0_i32, %c0_i32_0 : i32, i32, i32
  }
  func.func @transform_3(%arg0: i32, %arg1: i32) -> (i32, i32, i32) {
    %c0_i32 = arith.constant 0 : i32
    %c0_i32_0 = arith.constant 0 : i32
    %c0_i32_1 = arith.constant 0 : i32
    return %arg0, %c0_i32, %c0_i32_0 : i32, i32, i32
  }
  func.func @transform_4(%arg0: i32, %arg1: i32) -> (i32, i32, i32, i32) {
    %c0_i32 = arith.constant 0 : i32
    %0 = arith.muli %arg0, %c0_i32 : i32
    %c2_i32 = arith.constant 2 : i32
    %1 = arith.muli %c2_i32, %arg0 : i32
    %c1_i32 = arith.constant 1 : i32
    %2 = arith.subi %c1_i32, %1 : i32
    %3 = arith.muli %2, %arg1 : i32
    %4 = arith.addi %0, %3 : i32
    %c0_i32_0 = arith.constant 0 : i32
    %c0_i32_1 = arith.constant 0 : i32
    %c0_i32_2 = arith.constant 0 : i32
    return %arg0, %4, %c0_i32_0, %c0_i32_1 : i32, i32, i32, i32
  }
  func.func @transform_5(%arg0: i32, %arg1: i32) -> (i32, i32, i32) {
    %c0_i32 = arith.constant 0 : i32
    %c0_i32_0 = arith.constant 0 : i32
    %c0_i32_1 = arith.constant 0 : i32
    return %arg0, %c0_i32, %c0_i32_0 : i32, i32, i32
  }
  func.func @transform_6(%arg0: i32, %arg1: i32) -> (i32, i32, i32) {
    %c0_i32 = arith.constant 0 : i32
    %c0_i32_0 = arith.constant 0 : i32
    %c0_i32_1 = arith.constant 0 : i32
    return %arg0, %c0_i32, %c0_i32_0 : i32, i32, i32
  }
}

</mosaic_0001>

<bundles_post_ra>
// kernel: _lambda_.1
= control target key start
LH: loop header
LB: loop body
LE: loop exit
PB: predicated region body
PF: predicated region fallthrough
CT: control target
= control target key end

     0   :  { %s3335_s21 = smov 0   ;;  %s3337_s22 = smov 0   ;;  %s3947_s0 = inlined_call_operand.vmem [shape: f32[8,8,16], index: 0, kind: input, shape index: {}]   ;;  %s3948_s1 = inlined_call_operand.vmem [shape: f32[2,16,512], index: 1, kind: input, shape index: {}]   ;;  %s3949_s2 = inlined_call_operand.vmem [shape: f32[2,128,512], index: 2, kind: input, shape index: {}]   ;;  %s3950_s3 = inlined_call_operand.vmem [shape: f32[2,1,512], index: 3, kind: input, shape index: {}]   ;;  %s3951_s4 = inlined_call_operand.vmem [shape: f32[2,8,8,128], index: 4, kind: output, shape index: {0}]   ;;  %s3952_s5 = inlined_call_operand.vmem [shape: f32[2,8,128], index: 5, kind: output, shape index: {1}]   ;;  %s3953_s6 = inlined_call_operand.vmem [shape: f32[2,8,128], index: 6, kind: output, shape index: {2}]  }
   0x1   :  { %s3339_s23 = smov 0  }
   0x2 LB: > { %s29_s24 = sadd.s32 1, %s3293_s22  ;;  %p2495_p0 = scmp.ge.s32.totalorder %s3297_s23, 1  ;;  %s3297_s23 = sphi %s3339_s23, %s17_s23   ;;  %s3293_s22 = sphi %s3337_s22, %s3955_s22   ;;  %s3289_s21 = sphi %s3335_s21, %s3954_s21  }
   0x3   : > { %p31_p1 = scmp.ge.s32.totalorder %s29_s24, 2  ;;  %p279_p2 = scmp.lt.s32.totalorder %s3297_s23, 3 }
   0x5   : > { %s3957_s24 = smov (%p31_p1, %s29_s24), 0  ;;  %p280_p3 = pnand %p2495_p0, %p279_p2 }
   0x6   : > { %p353_p4 = scmp.lt.s32.totalorder (!%p280_p3), %s3289_s21, 1  ;;  %v3299_v0 = vmov (!%p280_p3), 0.0   ;;  %v397_v12 = vld [vmem:[%s3947_s0] sm:$0xff] (!%p280_p3)  ;;  %vm435_vm0 = vcmask (!%p280_p3), 130048   ;;  %v398_v26 = vld [vmem:[%s3947_s0 + $0x8] sm:$0xff] (!%p280_p3)  ;;  %v399_v51 = vld [vmem:[%s3947_s0 + $0x10] sm:$0xff] (!%p280_p3) }
   0x7   : > { %283 = sbr.rel (%p280_p3) target bundleno = 2131 (0x853), region = 36  ;;  %524 = vmatprep.mubr.f32.mxu0 (!%p280_p3), %v3299_v0  ;;  %637 = vmatprep.mubr.f32.mxu1 (!%p280_p3), %v3299_v0  ;;  %s2557_s10 = sshll.u32 (!%p280_p3), %s3289_s21, 3 }
   0x8   : > { %s2600_s12 = smul.u32 (!%p280_p3), 224, %s3289_s21 }
   0x9   : > { %s2528_s14 = smul.u32 (!%p280_p3), 56, %s3289_s21 }
   0xa   : > { %s787_s13 = scalar_lea.vmem (!%p280_p3), [#allocation2], %s2600_s12  ;;  %s2537_s20 = smul.u32 (!%p280_p3), 40, %s3289_s21 }
   0xb   : > { %s2539_s28 = smul.u32 (!%p280_p3), 96, %s3289_s21  ;;  %s1510_s12 = ssub.s32 (!%p280_p3), 4, %s3289_s21 }
   0xc   : > { %s2564_s15 = sshll.u32 (!%p280_p3), %s1510_s12, 3 }
   0xd   : > { %s2365_s29 = scalar_lea.vmem (!%p280_p3), [#allocation2], %s2539_s28 }
   0xe   : > { %s3359_s25 = scalar_select %p353_p4, %s3289_s21, 1 }
  0x10   : > { %s2597_s26 = sshll.u32 %s3359_s25, 6  ;;  %s2598_s27 = sshll.u32 %s3359_s25, 9 }
  0x11   : > { %s357_s30 = scalar_lea.vmem %s3948_s1, %s2597_s26  ;;  %s3371_s9 = scalar_lea.vmem %s3949_s2, %s2598_s27 }
  0x12   : > { %v406_v1 = vld [vmem:[%s357_s30 + $0x8] sm:$0xff]  ;;  %v408_v3 = vld [vmem:[%s357_s30 + $0x18] sm:$0xff]  ;;  %v405_v6 = vld [vmem:[%s357_s30] sm:$0xff]  ;;  %s2501_s8 = sshll.u32 %s3359_s25, 2  ;;  %s3681_s17 = scalar_lea.vmem %s3951_s4, %s2597_s26 }
  0x13   : > { %v410_v2 = vld [vmem:[%s357_s30 + $0x28] sm:$0xff]  ;;  %v412_v5 = vld [vmem:[%s357_s30 + $0x38] sm:$0xff]  ;;  %v409_v7 = vld [vmem:[%s357_s30 + $0x20] sm:$0xff]  ;;  %s366_s11 = scalar_lea.vmem %s3950_s3, %s2501_s8  ;;  %s963_s18 = scalar_lea.vmem %s3681_s17, %s2528_s14 }
  0x14   : > { %v2602_v4 = vpack.c.bf16 %v410_v2, %v406_v1  ;;  %v2606_v8 = vpack.c.bf16 %v412_v5, %v408_v3  ;;  %v2604_v9 = vpack.c.bf16 %v409_v7, %v405_v6  ;;  %v407_v10 = vld [vmem:[%s357_s30 + $0x10] sm:$0xff]  ;;  %v719_v14 = vld [vmem:[%s3371_s9 + $0x8] sm:$0xff]  ;;  %v718_v16 = vld [vmem:[%s3371_s9] sm:$0xff]  ;;  %s2529_s26 = smul.u32 160, %s3289_s21  ;;  %s2361_s27 = scalar_lea.vmem %s3681_s17, %s2537_s20 }
  0x15   : > { %v411_v11 = vld [vmem:[%s357_s30 + $0x30] sm:$0xff]  ;;  %v723_v15 = vld [vmem:[%s3371_s9 + $0x28] sm:$0xff]  ;;  %v722_v18 = vld [vmem:[%s3371_s9 + $0x20] sm:$0xff]  ;;  %s2547_s30 = smul.u32 24, %s3289_s21  ;;  %s2549_s8 = sshll.u32 %s3289_s21, 5 }
  0x16   : > { %2603 = vmatprep.subr.bf16.mxu0 %v2602_v4  ;;  %v2608_v13 = vpack.c.bf16 %v411_v11, %v407_v10  ;;  %2607 = vmatprep.subr.bf16.mxu1 %v2606_v8  ;;  %v3379_v17 = vpack.c.bf16 %v723_v15, %v719_v14  ;;  %v721_v19 = vld [vmem:[%s3371_s9 + $0x18] sm:$0xff]  ;;  %v3384_v21 = vpack.c.bf16 %v722_v18, %v718_v16  ;;  %v720_v23 = vld [vmem:[%s3371_s9 + $0x10] sm:$0xff]  ;;  %v727_v25 = vld [vmem:[%s3371_s9 + $0x48] sm:$0xff]  ;;  %s2357_s19 = scalar_lea.vmem [#allocation2], %s2529_s26  ;;  %s1689_s16 = scalar_lea.vmem %s3681_s17, %s2564_s15 }
  0x17   : > { %2605 = vmatpush1.bf16.msra.mxu0 %v2604_v9  ;;  %v725_v20 = vld [vmem:[%s3371_s9 + $0x38] sm:$0xff]  ;;  %v724_v24 = vld [vmem:[%s3371_s9 + $0x30] sm:$0xff]  ;;  %v731_v28 = vld [vmem:[%s3371_s9 + $0x68] sm:$0xff]  ;;  %s2369_s7 = scalar_lea.vmem %s3681_s17, %s2547_s30 }
  0x18   : > { %2609 = vmatpush1.bf16.msra.mxu1 %v2608_v13  ;;  %v3386_v22 = vpack.c.bf16 %v725_v20, %v721_v19  ;;  %2611 = vmatprep.subr.bf16.mxu0 %v3379_v17  ;;  %v3395_v27 = vpack.c.bf16 %v724_v24, %v720_v23  ;;  %v726_v29 = vld [vmem:[%s3371_s9 + $0x40] sm:$0xff]  ;;  %v3402_v31 = vpack.c.bf16 %v731_v28, %v727_v25  ;;  %v729_v32 = vld [vmem:[%s3371_s9 + $0x58] sm:$0xff]  ;;  %v728_v34 = vld [vmem:[%s3371_s9 + $0x50] sm:$0xff] }
  0x19   : > { %v730_v30 = vld [vmem:[%s3371_s9 + $0x60] sm:$0xff]  ;;  %v733_v33 = vld [vmem:[%s3371_s9 + $0x78] sm:$0xff]  ;;  %v732_v36 = vld [vmem:[%s3371_s9 + $0x70] sm:$0xff] }
  0x1a   : > { %2507 = vmatmul.mubr.msk.f32.vlgmr.msra.gmra.mrb[0].mxu0 %vm435_vm0, %v397_v12  ;;  %2643 = vmatprep.subr.bf16.mxu1 %v3386_v22  ;;  %v3409_v35 = vpack.c.bf16 %v733_v33, %v729_v32  ;;  %v735_v37 = vld [vmem:[%s3371_s9 + $0x88] sm:$0xff]  ;;  %v3416_v39 = vpack.c.bf16 %v730_v30, %v726_v29  ;;  %v734_v40 = vld [vmem:[%s3371_s9 + $0x80] sm:$0xff]  ;;  %v737_v41 = vld [vmem:[%s3371_s9 + $0x98] sm:$0xff]  ;;  %v3422_v42 = vpack.c.bf16 %v732_v36, %v728_v34 }
  0x1b   : > { %2515 = vmatmul.mubr.msk.f32.vlgmr.msra.gmra.mrb[0].mxu1 %vm435_vm0, %v397_v12  ;;  %530 = vmatprep.mubr.f32.mxu0 %v3299_v0  ;;  %v739_v38 = vld [vmem:[%s3371_s9 + $0xa8] sm:$0xff]  ;;  %v738_v44 = vld [vmem:[%s3371_s9 + $0xa0] sm:$0xff]  ;;  %v741_v45 = vld [vmem:[%s3371_s9 + $0xb8] sm:$0xff] }
  0x1c   : > { %643 = vmatprep.mubr.f32.mxu1 %v3299_v0  ;;  %2613 = vmatpush1.bf16.msra.mxu0 %v3384_v21  ;;  %v3424_v43 = vpack.c.bf16 %v739_v38, %v735_v37  ;;  %v736_v46 = vld [vmem:[%s3371_s9 + $0x90] sm:$0xff]  ;;  %v3431_v47 = vpack.c.bf16 %v741_v45, %v737_v41  ;;  %v743_v49 = vld [vmem:[%s3371_s9 + $0xc8] sm:$0xff]  ;;  %v745_v52 = vld [vmem:[%s3371_s9 + $0xd8] sm:$0xff]  ;;  %v3445_v54 = vpack.c.bf16 %v738_v44, %v734_v40 }
  0x1d   : > { %2645 = vmatpush1.bf16.msra.mxu1 %v3395_v27  ;;  %2615 = vmatprep.subr.bf16.mxu0 %v3402_v31  ;;  %v740_v48 = vld [vmem:[%s3371_s9 + $0xb0] sm:$0xff]  ;;  %v747_v50 = vld [vmem:[%s3371_s9 + $0xe8] sm:$0xff]  ;;  %v749_v53 = vld [vmem:[%s3371_s9 + $0xf8] sm:$0xff] }
  0x1e   : > { %2508 = vmatmul.mubr.msk.f32.gmra.mrb[2].mxu0 %vm435_vm0, %v398_v26  ;;  %2647 = vmatprep.subr.bf16.mxu1 %v3409_v35  ;;  %v3449_v55 = vpack.c.bf16 %v740_v48, %v736_v46  ;;  %v3451_v56 = vpack.c.bf16 %v747_v50, %v743_v49  ;;  %v742_v57 = vld [vmem:[%s3371_s9 + $0xc0] sm:$0xff]  ;;  %v744_v59 = vld [vmem:[%s3371_s9 + $0xd0] sm:$0xff]  ;;  %v3458_v60 = vpack.c.bf16 %v749_v53, %v745_v52  ;;  %v751_v62 = vld [vmem:[%s3371_s9 + $0x108] sm:$0xff] }
  0x1f   : > { %2516 = vmatmul.mubr.msk.f32.gmra.mrb[2].mxu1 %vm435_vm0, %v398_v26  ;;  %536 = vmatprep.mubr.f32.mxu0 %v3299_v0  ;;  %v746_v58 = vld [vmem:[%s3371_s9 + $0xe0] sm:$0xff]  ;;  %v748_v61 = vld [vmem:[%s3371_s9 + $0xf0] sm:$0xff]  ;;  %v755_v63 = vld [vmem:[%s3371_s9 + $0x128] sm:$0xff] }
  0x20   : > { %649 = vmatprep.mubr.f32.mxu1 %v3299_v0  ;;  %2617 = vmatpush1.bf16.msra.mxu0 %v3416_v39  ;;  %v400_v1 = vld [vmem:[%s3947_s0 + $0x18] sm:$0xff]  ;;  %v3472_v4 = vpack.c.bf16 %v746_v58, %v742_v57  ;;  %v3476_v5 = vpack.c.bf16 %v748_v61, %v744_v59  ;;  %v3478_v6 = vpack.c.bf16 %v755_v63, %v751_v62  ;;  %v750_v7 = vld [vmem:[%s3371_s9 + $0x100] sm:$0xff]  ;;  %v752_v9 = vld [vmem:[%s3371_s9 + $0x110] sm:$0xff] }
  0x21   : > { %2649 = vmatpush1.bf16.msra.mxu1 %v3422_v42  ;;  %2619 = vmatprep.subr.bf16.mxu0 %v3424_v43  ;;  %v753_v2 = vld [vmem:[%s3371_s9 + $0x118] sm:$0xff]  ;;  %v754_v8 = vld [vmem:[%s3371_s9 + $0x120] sm:$0xff]  ;;  %v756_v11 = vld [vmem:[%s3371_s9 + $0x130] sm:$0xff] }
  0x22   : > { %2509 = vmatmul.mubr.msk.f32.gmra.mrb[4].mxu0 %vm435_vm0, %v399_v51  ;;  %2651 = vmatprep.subr.bf16.mxu1 %v3431_v47  ;;  %v757_v3 = vld [vmem:[%s3371_s9 + $0x138] sm:$0xff]  ;;  %v759_v12 = vld [vmem:[%s3371_s9 + $0x148] sm:$0xff]  ;;  %v401_v14 = vld [vmem:[%s3947_s0 + $0x20] sm:$0xff]  ;;  %v3499_v18 = vpack.c.bf16 %v754_v8, %v750_v7  ;;  %v3503_v19 = vpack.c.bf16 %v756_v11, %v752_v9  ;;  %v415_v8 = vlaneseq }
  0x23   : > { %2517 = vmatmul.mubr.msk.f32.gmra.mrb[4].mxu1 %vm435_vm0, %v399_v51  ;;  %542 = vmatprep.mubr.f32.mxu0 %v3299_v0  ;;  %v3485_v10 = vpack.c.bf16 %v757_v3, %v753_v2  ;;  %v763_v13 = vld [vmem:[%s3371_s9 + $0x168] sm:$0xff]  ;;  %v761_v15 = vld [vmem:[%s3371_s9 + $0x158] sm:$0xff]  ;;  %v758_v23 = vld [vmem:[%s3371_s9 + $0x140] sm:$0xff] }
  0x24   : > { %655 = vmatprep.mubr.f32.mxu1 %v3299_v0  ;;  %2621 = vmatpush1.bf16.msra.mxu0 %v3445_v54  ;;  %v765_v16 = vld [vmem:[%s3371_s9 + $0x178] sm:$0xff]  ;;  %v3505_v20 = vpack.c.bf16 %v763_v13, %v759_v12  ;;  %v762_v24 = vld [vmem:[%s3371_s9 + $0x160] sm:$0xff]  ;;  %v760_v25 = vld [vmem:[%s3371_s9 + $0x150] sm:$0xff]  ;;  %v416_v9 = vshrl.u32 %v415_v8, 7 }
  0x25   : > { %2653 = vmatpush1.bf16.msra.mxu1 %v3449_v55  ;;  %2623 = vmatprep.subr.bf16.mxu0 %v3451_v56  ;;  %v3512_v26 = vpack.c.bf16 %v765_v16, %v761_v15  ;;  %v764_v28 = vld [vmem:[%s3371_s9 + $0x170] sm:$0xff]  ;;  %v767_v29 = vld [vmem:[%s3371_s9 + $0x188] sm:$0xff]  ;;  %v769_v33 = vld [vmem:[%s3371_s9 + $0x198] sm:$0xff]  ;;  %v3526_v36 = vpack.c.bf16 %v762_v24, %v758_v23 }
  0x26   : > { %2510 = vmatmul.mubr.msk.f32.gmra.mrb[6].mxu0 %vm435_vm0, %v400_v1  ;;  %2655 = vmatprep.subr.bf16.mxu1 %v3458_v60  ;;  %v771_v30 = vld [vmem:[%s3371_s9 + $0x1a8] sm:$0xff]  ;;  %v773_v34 = vld [vmem:[%s3371_s9 + $0x1b8] sm:$0xff]  ;;  %v3530_v37 = vpack.c.bf16 %v764_v28, %v760_v25  ;;  %v766_v40 = vld [vmem:[%s3371_s9 + $0x180] sm:$0xff]  ;;  %v417_v11 = vsub.s32 0, %v416_v9  ;;  %v425_v13 = vsub.s32 2, %v416_v9  ;;  %v429_v15 = vsub.s32 3, %v416_v9 }
  0x27   : > { %2518 = vmatmul.mubr.msk.f32.gmra.mrb[6].mxu1 %vm435_vm0, %v400_v1  ;;  %548 = vmatprep.mubr.f32.mxu0 %v3299_v0  ;;  %v402_v32 = vld [vmem:[%s3947_s0 + $0x28] sm:$0xff]  ;;  %v3532_v38 = vpack.c.bf16 %v771_v30, %v767_v29  ;;  %v770_v41 = vld [vmem:[%s3371_s9 + $0x1a0] sm:$0xff]  ;;  %v768_v44 = vld [vmem:[%s3371_s9 + $0x190] sm:$0xff]  ;;  %v3539_v45 = vpack.c.bf16 %v773_v34, %v769_v33 }
  0x28   : > { %661 = vmatprep.mubr.f32.mxu1 %v3299_v0  ;;  %2625 = vmatpush1.bf16.msra.mxu0 %v3472_v4  ;;  %v772_v46 = vld [vmem:[%s3371_s9 + $0x1b0] sm:$0xff]  ;;  %v775_v48 = vld [vmem:[%s3371_s9 + $0x1c8] sm:$0xff]  ;;  %v777_v51 = vld [vmem:[%s3371_s9 + $0x1d8] sm:$0xff]  ;;  %v3553_v53 = vpack.c.bf16 %v770_v41, %v766_v40 }
  0x29   : > { %2657 = vmatpush1.bf16.msra.mxu1 %v3476_v5  ;;  %2627 = vmatprep.subr.bf16.mxu0 %v3478_v6  ;;  %v779_v49 = vld [vmem:[%s3371_s9 + $0x1e8] sm:$0xff]  ;;  %v403_v50 = vld [vmem:[%s3947_s0 + $0x30] sm:$0xff]  ;;  %v781_v52 = vld [vmem:[%s3371_s9 + $0x1f8] sm:$0xff]  ;;  %v3557_v57 = vpack.c.bf16 %v772_v46, %v768_v44 }
  0x2a   : > { %2511 = vmatmul.mubr.msk.f32.gmra.mrb[8].mxu0 %vm435_vm0, %v401_v14  ;;  %2659 = vmatprep.subr.bf16.mxu1 %v3485_v10  ;;  %v3559_v58 = vpack.c.bf16 %v779_v49, %v775_v48  ;;  %v774_v59 = vld [vmem:[%s3371_s9 + $0x1c0] sm:$0xff]  ;;  %v3565_v62 = vpack.c.bf16 %v781_v52, %v777_v51  ;;  %v776_v63 = vld [vmem:[%s3371_s9 + $0x1d0] sm:$0xff]  ;;  %v404_v2 = vld [vmem:[%s3947_s0 + $0x38] sm:$0xff] }
  0x2b   : > { %2519 = vmatmul.mubr.msk.f32.gmra.mrb[8].mxu1 %vm435_vm0, %v401_v14  ;;  %554 = vmatprep.mubr.f32.mxu0 %v3299_v0  ;;  %v778_v61 = vld [vmem:[%s3371_s9 + $0x1e0] sm:$0xff]  ;;  %v780_v1 = vld [vmem:[%s3371_s9 + $0x1f0] sm:$0xff]  ;;  %v421_v14 = vsub.s32 1, %v416_v9  ;;  %s2372_s9 = scalar_lea.vmem [#allocation2], %s2549_s8 }
  0x2c   : > { %667 = vmatprep.mubr.f32.mxu1 %v3299_v0  ;;  %2629 = vmatpush1.bf16.msra.mxu0 %v3499_v18  ;;  %v3576_v3 = vpack.c.bf16 %v778_v61, %v774_v59  ;;  %v3580_v7 = vpack.c.bf16 %v780_v1, %v776_v63  ;;  %v413_v12 = vld [vmem:[%s366_s11] sm:$0xf]  ;;  %s2375_s11 = scalar_lea.vmem %s3681_s17, %s2557_s10 }
  0x2d   : > { %2661 = vmatpush1.bf16.msra.mxu1 %v3503_v19  ;;  %2631 = vmatprep.subr.bf16.mxu0 %v3505_v20  ;;  %v3631_v16 = vrot.slane %v413_v12, %v417_v11  ;;  %v3633_v23 = vrot.slane %v413_v12, %v425_v13  ;;  %v3635_v24 = vrot.slane %v413_v12, %v421_v14 }
  0x2e   : > { %2512 = vmatmul.mubr.msk.f32.gmra.mrb[10].mxu0 %vm435_vm0, %v402_v32  ;;  %2663 = vmatprep.subr.bf16.mxu1 %v3512_v26  ;;  %v3637_v25 = vrot.slane %v413_v12, %v429_v15 }
  0x2f   : > { %2520 = vmatmul.mubr.msk.f32.gmra.mrb[10].mxu1 %vm435_vm0, %v402_v32  ;;  %560 = vmatprep.mubr.f32.mxu0 %v3299_v0 }
  0x30   : > { %673 = vmatprep.mubr.f32.mxu1 %v3299_v0  ;;  %2633 = vmatpush1.bf16.msra.mxu0 %v3526_v36 }
  0x31   : > { %2665 = vmatpush1.bf16.msra.mxu1 %v3530_v37  ;;  %2635 = vmatprep.subr.bf16.mxu0 %v3532_v38 }
  0x32   : > { %2513 = vmatmul.mubr.msk.f32.gmra.mrb[12].mxu0 %vm435_vm0, %v403_v50  ;;  %2667 = vmatprep.subr.bf16.mxu1 %v3539_v45 }
  0x33   : > { %2521 = vmatmul.mubr.msk.f32.gmra.mrb[12].mxu1 %vm435_vm0, %v403_v50  ;;  %566 = vmatprep.mubr.f32.mxu0 %v3299_v0 }
  0x34   : > { %679 = vmatprep.mubr.f32.mxu1 %v3299_v0  ;;  %2637 = vmatpush1.bf16.msra.mxu0 %v3553_v53 }
  0x35   : > { %2669 = vmatpush1.bf16.msra.mxu1 %v3557_v57  ;;  %2639 = vmatprep.subr.bf16.mxu0 %v3559_v58 }
  0x36   : > { %2514 = vmatmul.mubr.msk.f32.gmra.mrb[14].mxu0 %vm435_vm0, %v404_v2  ;;  %2671 = vmatprep.subr.bf16.mxu1 %v3565_v62 }
  0x37   : > { %2522 = vmatmul.mubr.msk.f32.gmra.mrb[14].mxu1 %vm435_vm0, %v404_v2  ;;  %856 = vmatprep.mubr.f32.mxu0 %v3299_v0 }
  0x38   : > { %2641 = vmatpush1.bf16.msra.mxu0 %v3576_v3  ;;  %927 = vmatprep.mubr.f32.mxu1 %v3299_v0 }
  0x39   : > { %2673 = vmatpush1.bf16.msra.mxu1 %v3580_v7  ;;  %2675 = vmatprep.subr.bf16.mxu0 %v3379_v17 }
  0x3a   : > { %2707 = vmatprep.subr.bf16.mxu1 %v3386_v22 }
  0x3b   : > { %857 = vmatmul.mubr.f32.vlgmr.msra.gmra.mrb[16].mxu0 %v3299_v0 }
  0x3c   : > { %928 = vmatmul.mubr.f32.vlgmr.msra.gmra.mrb[16].mxu1 %v3299_v0  ;;  %2677 = vmatpush1.bf16.msra.mxu0 %v3384_v21 }
  0x3d   : > { %2709 = vmatpush1.bf16.msra.mxu1 %v3395_v27  ;;  %2679 = vmatprep.subr.bf16.mxu0 %v3402_v31 }
  0x3e   : > { %2711 = vmatprep.subr.bf16.mxu1 %v3409_v35  ;;  %1038 = vmatprep.mubr.f32.mxu0 %v3299_v0 }
  0x3f   : > { %1109 = vmatprep.mubr.f32.mxu1 %v3299_v0 }
  0x40   : > { %2681 = vmatpush1.bf16.msra.mxu0 %v3416_v39 }
  0x41   : > { %2713 = vmatpush1.bf16.msra.mxu1 %v3422_v42  ;;  %2683 = vmatprep.subr.bf16.mxu0 %v3424_v43 }
  0x42   : > { %2715 = vmatprep.subr.bf16.mxu1 %v3431_v47 }
  0x44   : > { %2685 = vmatpush1.bf16.msra.mxu0 %v3445_v54 }
  0x45   : > { %2717 = vmatpush1.bf16.msra.mxu1 %v3449_v55  ;;  %2687 = vmatprep.subr.bf16.mxu0 %v3451_v56 }
  0x46   : > { %2719 = vmatprep.subr.bf16.mxu1 %v3458_v60 }
  0x48   : > { %2689 = vmatpush1.bf16.msra.mxu0 %v3472_v4 }
  0x49   : > { %2721 = vmatpush1.bf16.msra.mxu1 %v3476_v5  ;;  %2691 = vmatprep.subr.bf16.mxu0 %v3478_v6 }
  0x4a   : > { %2723 = vmatprep.subr.bf16.mxu1 %v3485_v10 }
  0x4c   : > { %2693 = vmatpush1.bf16.msra.mxu0 %v3499_v18 }
  0x4d   : > { %2725 = vmatpush1.bf16.msra.mxu1 %v3503_v19  ;;  %2695 = vmatprep.subr.bf16.mxu0 %v3505_v20 }
  0x4e   : > { %2727 = vmatprep.subr.bf16.mxu1 %v3512_v26 }
  0x50   : > { %2697 = vmatpush1.bf16.msra.mxu0 %v3526_v36 }
  0x51   : > { %2729 = vmatpush1.bf16.msra.mxu1 %v3530_v37  ;;  %2699 = vmatprep.subr.bf16.mxu0 %v3532_v38 }
  0x52   : > { %2731 = vmatprep.subr.bf16.mxu1 %v3539_v45 }
  0x54   : > { %2701 = vmatpush1.bf16.msra.mxu0 %v3553_v53 }
  0x55   : > { %2733 = vmatpush1.bf16.msra.mxu1 %v3557_v57  ;;  %2703 = vmatprep.subr.bf16.mxu0 %v3559_v58 }
  0x56   : > { %2735 = vmatprep.subr.bf16.mxu1 %v3565_v62 }
  0x58   : > { %2705 = vmatpush1.bf16.msra.mxu0 %v3576_v3 }
  0x59   : > { %2737 = vmatpush1.bf16.msra.mxu1 %v3580_v7  ;;  %2739 = vmatprep.subr.bf16.mxu0 %v3379_v17 }
  0x5a   : > { %2771 = vmatprep.subr.bf16.mxu1 %v3386_v22 }
  0xed   : > { %v526_v28 = vpop.f32.mrb[0].mxu0 }
  0xee   : > { %v527_v29 = vadd.f32 %v526_v28, %v3631_v16  ;;  %v639_v30 = vpop.f32.mrb[0].mxu1  ;;  %v528_v32 = vpop.f32.mrb[1].mxu0 }
  0xef   : > { %v640_v33 = vadd.f32 %v639_v30, %v3633_v23  ;;  %v529_v34 = vadd.f32 %v528_v32, %v3635_v24  ;;  %v641_v40 = vpop.f32.mrb[1].mxu1 }
  0xf0   : > { %686 = vst [vmem:[#allocation2] sm:$0xff] %v527_v29  ;;  %v642_v41 = vadd.f32 %v641_v40, %v3637_v25 }
  0xf1   : > { %688 = vst [vmem:[#allocation2 + $0x10] sm:$0xff] %v640_v33  ;;  %687 = vst [vmem:[#allocation2 + $0x8] sm:$0xff] %v529_v34  ;;  %v532_v44 = vpop.f32.mrb[2].mxu0 }
  0xf2   : > { %689 = vst [vmem:[#allocation2 + $0x18] sm:$0xff] %v642_v41  ;;  %v533_v46 = vadd.f32 %v532_v44, %v3631_v16  ;;  %v645_v48 = vpop.f32.mrb[2].mxu1  ;;  %v534_v49 = vpop.f32.mrb[3].mxu0 }
  0xf3   : > { %v646_v50 = vadd.f32 %v645_v48, %v3633_v23  ;;  %v535_v51 = vadd.f32 %v534_v49, %v3635_v24  ;;  %v647_v52 = vpop.f32.mrb[3].mxu1 }
  0xf4   : > { %690 = vst [vmem:[#allocation2 + $0x20] sm:$0xff] %v533_v46  ;;  %v648_v59 = vadd.f32 %v647_v52, %v3637_v25 }
  0xf5   : > { %692 = vst [vmem:[#allocation2 + $0x30] sm:$0xff] %v646_v50  ;;  %691 = vst [vmem:[#allocation2 + $0x28] sm:$0xff] %v535_v51  ;;  %v538_v61 = vpop.f32.mrb[4].mxu0 }
  0xf6   : > { %693 = vst [vmem:[#allocation2 + $0x38] sm:$0xff] %v648_v59  ;;  %v539_v63 = vadd.f32 %v538_v61, %v3631_v16  ;;  %v651_v1 = vpop.f32.mrb[4].mxu1  ;;  %v540_v2 = vpop.f32.mrb[5].mxu0 }
  0xf7   : > { %v652_v8 = vadd.f32 %v651_v1, %v3633_v23  ;;  %v541_v9 = vadd.f32 %v540_v2, %v3635_v24  ;;  %v653_v11 = vpop.f32.mrb[5].mxu1 }
  0xf8   : > { %694 = vst [vmem:[#allocation2 + $0x40] sm:$0xff] %v539_v63  ;;  %v654_v12 = vadd.f32 %v653_v11, %v3637_v25 }
  0xf9   : > { %696 = vst [vmem:[#allocation2 + $0x50] sm:$0xff] %v652_v8  ;;  %695 = vst [vmem:[#allocation2 + $0x48] sm:$0xff] %v541_v9  ;;  %v544_v13 = vpop.f32.mrb[6].mxu0 }
  0xfa   : > { %697 = vst [vmem:[#allocation2 + $0x58] sm:$0xff] %v654_v12  ;;  %v545_v14 = vadd.f32 %v544_v13, %v3631_v16  ;;  %v657_v15 = vpop.f32.mrb[6].mxu1  ;;  %v546_v28 = vpop.f32.mrb[7].mxu0 }
  0xfb   : > { %v658_v29 = vadd.f32 %v657_v15, %v3633_v23  ;;  %v547_v30 = vadd.f32 %v546_v28, %v3635_v24  ;;  %v659_v32 = vpop.f32.mrb[7].mxu1 }
  0xfc   : > { %698 = vst [vmem:[#allocation2 + $0x60] sm:$0xff] %v545_v14  ;;  %v660_v33 = vadd.f32 %v659_v32, %v3637_v25 }
  0xfd   : > { %700 = vst [vmem:[#allocation2 + $0x70] sm:$0xff] %v658_v29  ;;  %699 = vst [vmem:[#allocation2 + $0x68] sm:$0xff] %v547_v30  ;;  %v550_v34 = vpop.f32.mrb[8].mxu0 }
  0xfe   : > { %701 = vst [vmem:[#allocation2 + $0x78] sm:$0xff] %v660_v33  ;;  %v551_v40 = vadd.f32 %v550_v34, %v3631_v16  ;;  %v663_v41 = vpop.f32.mrb[8].mxu1  ;;  %v552_v44 = vpop.f32.mrb[9].mxu0 }
  0xff   : > { %v664_v46 = vadd.f32 %v663_v41, %v3633_v23  ;;  %v553_v48 = vadd.f32 %v552_v44, %v3635_v24  ;;  %v665_v49 = vpop.f32.mrb[9].mxu1 }
 0x100   : > { %702 = vst [vmem:[#allocation2 + $0x80] sm:$0xff] %v551_v40  ;;  %v666_v50 = vadd.f32 %v665_v49, %v3637_v25 }
 0x101   : > { %704 = vst [vmem:[#allocation2 + $0x90] sm:$0xff] %v664_v46  ;;  %703 = vst [vmem:[#allocation2 + $0x88] sm:$0xff] %v553_v48  ;;  %v556_v51 = vpop.f32.mrb[10].mxu0 }
 0x102   : > { %705 = vst [vmem:[#allocation2 + $0x98] sm:$0xff] %v666_v50  ;;  %v557_v52 = vadd.f32 %v556_v51, %v3631_v16  ;;  %v669_v59 = vpop.f32.mrb[10].mxu1  ;;  %v558_v61 = vpop.f32.mrb[11].mxu0 }
 0x103   : > { %v670_v63 = vadd.f32 %v669_v59, %v3633_v23  ;;  %v559_v1 = vadd.f32 %v558_v61, %v3635_v24  ;;  %v671_v2 = vpop.f32.mrb[11].mxu1 }
 0x104   : > { %706 = vst [vmem:[#allocation2 + $0xa0] sm:$0xff] %v557_v52  ;;  %v672_v8 = vadd.f32 %v671_v2, %v3637_v25 }
 0x105   : > { %708 = vst [vmem:[#allocation2 + $0xb0] sm:$0xff] %v670_v63  ;;  %707 = vst [vmem:[#allocation2 + $0xa8] sm:$0xff] %v559_v1  ;;  %v562_v9 = vpop.f32.mrb[12].mxu0 }
 0x106   : > { %709 = vst [vmem:[#allocation2 + $0xb8] sm:$0xff] %v672_v8  ;;  %v563_v11 = vadd.f32 %v562_v9, %v3631_v16  ;;  %v675_v12 = vpop.f32.mrb[12].mxu1  ;;  %v564_v13 = vpop.f32.mrb[13].mxu0 }
 0x107   : > { %v676_v14 = vadd.f32 %v675_v12, %v3633_v23  ;;  %v565_v15 = vadd.f32 %v564_v13, %v3635_v24  ;;  %v677_v28 = vpop.f32.mrb[13].mxu1 }
 0x108   : > { %710 = vst [vmem:[#allocation2 + $0xc0] sm:$0xff] %v563_v11  ;;  %v678_v29 = vadd.f32 %v677_v28, %v3637_v25 }
 0x109   : > { %712 = vst [vmem:[#allocation2 + $0xd0] sm:$0xff] %v676_v14  ;;  %711 = vst [vmem:[#allocation2 + $0xc8] sm:$0xff] %v565_v15  ;;  %v568_v30 = vpop.f32.mrb[14].mxu0 }
 0x10a   : > { %713 = vst [vmem:[#allocation2 + $0xd8] sm:$0xff] %v678_v29  ;;  %v569_v32 = vadd.f32 %v568_v30, %v3631_v16  ;;  %v681_v33 = vpop.f32.mrb[14].mxu1  ;;  %v570_v34 = vpop.f32.mrb[15].mxu0 }
 0x10b   : > { %v682_v40 = vadd.f32 %v681_v33, %v3633_v23  ;;  %v571_v41 = vadd.f32 %v570_v34, %v3635_v24  ;;  %v683_v44 = vpop.f32.mrb[15].mxu1 }
 0x10c   : > { %714 = vst [vmem:[#allocation2 + $0xe0] sm:$0xff] %v569_v32  ;;  %v684_v46 = vadd.f32 %v683_v44, %v3637_v25 }
 0x10d   : > { %716 = vst [vmem:[#allocation2 + $0xf0] sm:$0xff] %v682_v40  ;;  %715 = vst [vmem:[#allocation2 + $0xe8] sm:$0xff] %v571_v41 }
 0x10e   : > { %717 = vst [vmem:[#allocation2 + $0xf8] sm:$0xff] %v684_v46  ;;  %v858_v48 = vpop.f32.mrb[16].mxu0 }
 0x10f   : > { %v860_v49 = vpop.f32.mrb[17].mxu0  ;;  %v929_v50 = vpop.f32.mrb[16].mxu1 }
 0x110   : > { %v931_v51 = vpop.f32.mrb[17].mxu1 }
 0x115   : > { %v788_v16 = vld [vmem:[%s787_s13] sm:$0xff]  ;;  %v789_v52 = vld [vmem:[%s787_s13 + $0x8] sm:$0xff]  ;;  %v791_v24 = vld [vmem:[%s787_s13 + $0x18] sm:$0xff] }
 0x116   : > { %v934_v59 = vadd.f32 %v858_v48, %v788_v16  ;;  %v935_v61 = vadd.f32 %v860_v49, %v789_v52  ;;  %v937_v1 = vadd.f32 %v931_v51, %v791_v24  ;;  %v790_v25 = vld [vmem:[%s787_s13 + $0x10] sm:$0xff]  ;;  %v2530_v46 = vld [vmem:[%s2357_s19 + $0x20] sm:$0xff]  ;;  %v2531_v51 = vld [vmem:[%s2357_s19 + $0x28] sm:$0xff]  ;;  %s2601_s13 = sshll.u32 %s1510_s12, 5 }
 0x117   : > { %v936_v8 = vadd.f32 %v929_v50, %v790_v25  ;;  %s1513_s14 = scalar_lea.vmem [#allocation2], %s2601_s13  ;;  %s2593_s13 = smul.u32 4294967240, %s3289_s21 }
 0x118   : > { %v2525_v23 = vmul.f32 -1.442695, %v934_v59  ;;  %v2526_v63 = vmul.f32 -1.442695, %v935_v61  ;;  %v2527_v2 = vmul.f32 -1.442695, %v937_v1 }
 0x119   : > { %v2532_v1 = vld [vmem:[%s2357_s19 + $0x30] sm:$0xff] }
 0x11a   : > { %3147 = vpow2.f32 %v2525_v23 }
 0x11b   : > { %3149 = vpow2.f32 %v2526_v63  ;;  %v2533_v63 = vld [vmem:[%s2357_s19 + $0x38] sm:$0xff]  ;;  %s2573_s19 = smul.u32 4294967272, %s3289_s21 }
 0x11c   : > { %3151 = vpow2.f32 %v2527_v2 }
 0x11d   : > { %3153 = vtanh.f32 %v936_v8  ;;  %s2387_s20 = scalar_lea.vmem %s3681_s17, %s2573_s19 }
 0x124   : > { %v3148_v9 = vpop.eup %3147 }
 0x125   : > { %v3150_v11 = vpop.eup %3149  ;;  %v941_v12 = vadd.f32 1.0, %v3148_v9 }
 0x126   : > { %v947_v13 = vadd.f32 1.0, %v3150_v11  ;;  %v3152_v14 = vpop.eup %3151 }
 0x127   : > { %3155 = vrcp.f32 %v941_v12  ;;  %v3154_v15 = vpop.eup %3153  ;;  %v954_v32 = vadd.f32 1.0, %v3152_v14 }
 0x128   : > { %3157 = vrcp.f32 %v947_v13 }
 0x129   : > { %3159 = vrcp.f32 %v954_v32 }
 0x131   : > { %v3156_v28 = vpop.eup %3155 }
 0x132   : > { %v3158_v29 = vpop.eup %3157  ;;  %v958_v30 = vmul.f32 %v3156_v28, %v3154_v15 }
 0x133   : > { %v957_v33 = vmul.f32 0.0, %v3158_v29  ;;  %v3160_v40 = vpop.eup %3159 }
 0x135   : > { %v3672_v34 = vadd.f32 %v958_v30, %v957_v33 }
 0x137   : > { %3161 = vtanh.f32 %v3672_v34 }
 0x141   : > { %v3162_v41 = vpop.eup %3161 }
 0x142   : > { %v961_v44 = vmul.f32 %v3162_v41, %v3160_v40 }
 0x144   : > { %964 = vst [vmem:[%s963_s18] sm:$0xff] %v961_v44  ;;  %1039 = vmatmul.mubr.f32.vlgmr.msra.gmra.mrb[18].mxu0 %v961_v44  ;;  %1110 = vmatmul.mubr.f32.vlgmr.msra.gmra.mrb[18].mxu1 %v961_v44  ;;  %s2565_s18 = smul.u32 4294967200, %s3289_s21 }
 0x145   : > { %2741 = vmatpush1.bf16.msra.mxu0 %v3384_v21  ;;  %2773 = vmatpush1.bf16.msra.mxu1 %v3395_v27 }
 0x146   : > { %2743 = vmatprep.subr.bf16.mxu0 %v3402_v31  ;;  %2775 = vmatprep.subr.bf16.mxu1 %v3409_v35  ;;  %s2383_s26 = scalar_lea.vmem [#allocation2], %s2565_s18 }
 0x147   : > { %1220 = vmatprep.mubr.f32.mxu0 %v3299_v0  ;;  %1291 = vmatprep.mubr.f32.mxu1 %v3299_v0 }
 0x149   : > { %2745 = vmatpush1.bf16.msra.mxu0 %v3416_v39  ;;  %2777 = vmatpush1.bf16.msra.mxu1 %v3422_v42 }
 0x14a   : > { %2747 = vmatprep.subr.bf16.mxu0 %v3424_v43  ;;  %2779 = vmatprep.subr.bf16.mxu1 %v3431_v47 }
 0x14d   : > { %2749 = vmatpush1.bf16.msra.mxu0 %v3445_v54  ;;  %2781 = vmatpush1.bf16.msra.mxu1 %v3449_v55 }
 0x14e   : > { %2751 = vmatprep.subr.bf16.mxu0 %v3451_v56  ;;  %2783 = vmatprep.subr.bf16.mxu1 %v3458_v60 }
 0x151   : > { %2753 = vmatpush1.bf16.msra.mxu0 %v3472_v4  ;;  %2785 = vmatpush1.bf16.msra.mxu1 %v3476_v5 }
 0x152   : > { %2755 = vmatprep.subr.bf16.mxu0 %v3478_v6  ;;  %2787 = vmatprep.subr.bf16.mxu1 %v3485_v10 }
 0x155   : > { %2757 = vmatpush1.bf16.msra.mxu0 %v3499_v18  ;;  %2789 = vmatpush1.bf16.msra.mxu1 %v3503_v19 }
 0x156   : > { %2759 = vmatprep.subr.bf16.mxu0 %v3505_v20  ;;  %2791 = vmatprep.subr.bf16.mxu1 %v3512_v26 }
 0x159   : > { %2761 = vmatpush1.bf16.msra.mxu0 %v3526_v36  ;;  %2793 = vmatpush1.bf16.msra.mxu1 %v3530_v37 }
 0x15a   : > { %2763 = vmatprep.subr.bf16.mxu0 %v3532_v38  ;;  %2795 = vmatprep.subr.bf16.mxu1 %v3539_v45 }
 0x15d   : > { %2765 = vmatpush1.bf16.msra.mxu0 %v3553_v53  ;;  %2797 = vmatpush1.bf16.msra.mxu1 %v3557_v57 }
 0x15e   : > { %2767 = vmatprep.subr.bf16.mxu0 %v3559_v58  ;;  %2799 = vmatprep.subr.bf16.mxu1 %v3565_v62 }
 0x161   : > { %2769 = vmatpush1.bf16.msra.mxu0 %v3576_v3  ;;  %2801 = vmatpush1.bf16.msra.mxu1 %v3580_v7 }
 0x162   : > { %2803 = vmatprep.subr.bf16.mxu0 %v3379_v17  ;;  %2835 = vmatprep.subr.bf16.mxu1 %v3386_v22 }
 0x217   : > { %v1040_v48 = vpop.f32.mrb[18].mxu0  ;;  %v1111_v49 = vpop.f32.mrb[18].mxu1 }
 0x218   : > { %v1116_v50 = vadd.f32 %v2530_v46, %v1040_v48  ;;  %v1042_v16 = vpop.f32.mrb[19].mxu0  ;;  %v1113_v52 = vpop.f32.mrb[19].mxu1  ;;  %v1118_v2 = vadd.f32 %v2532_v1, %v1111_v49 }
 0x219   : > { %v1117_v59 = vadd.f32 %v2531_v51, %v1042_v16  ;;  %v1119_v24 = vadd.f32 %v2533_v63, %v1113_v52 }
 0x21a   : > { %v2534_v61 = vmul.f32 -1.442695, %v1116_v50  ;;  %v2541_v50 = vld [vmem:[%s2365_s29 + $0x48] sm:$0xff] }
 0x21b   : > { %v2535_v23 = vmul.f32 -1.442695, %v1117_v59  ;;  %v2536_v25 = vmul.f32 -1.442695, %v1119_v24  ;;  %v2542_v24 = vld [vmem:[%s2365_s29 + $0x50] sm:$0xff] }
 0x21c   : > { %3163 = vpow2.f32 %v2534_v61 }
 0x21d   : > { %3165 = vpow2.f32 %v2535_v23  ;;  %v2543_v23 = vld [vmem:[%s2365_s29 + $0x58] sm:$0xff] }
 0x21e   : > { %3167 = vpow2.f32 %v2536_v25 }
 0x21f   : > { %3169 = vtanh.f32 %v1118_v2 }
 0x226   : > { %v3164_v8 = vpop.eup %3163 }
 0x227   : > { %v3166_v9 = vpop.eup %3165  ;;  %v1123_v11 = vadd.f32 1.0, %v3164_v8 }
 0x228   : > { %v1129_v12 = vadd.f32 1.0, %v3166_v9  ;;  %v3168_v13 = vpop.eup %3167 }
 0x229   : > { %3171 = vrcp.f32 %v1123_v11  ;;  %v3170_v14 = vpop.eup %3169  ;;  %v1136_v30 = vadd.f32 1.0, %v3168_v13 }
 0x22a   : > { %3173 = vrcp.f32 %v1129_v12 }
 0x22b   : > { %3175 = vrcp.f32 %v1136_v30 }
 0x233   : > { %v3172_v15 = vpop.eup %3171 }
 0x234   : > { %v3174_v28 = vpop.eup %3173  ;;  %v1140_v29 = vmul.f32 %v3172_v15, %v3170_v14 }
 0x235   : > { %v1139_v32 = vmul.f32 %v3174_v28, %v3672_v34  ;;  %v3176_v40 = vpop.eup %3175  ;;  %v2540_v34 = vld [vmem:[%s2365_s29 + $0x40] sm:$0xff]  ;;  %s2583_s29 = smul.u32 4294967256, %s3289_s21 }
 0x237   : > { %v3720_v33 = vadd.f32 %v1140_v29, %v1139_v32  ;;  %s2395_s30 = scalar_lea.vmem %s3681_s17, %s2583_s29 }
 0x239   : > { %3177 = vtanh.f32 %v3720_v33 }
 0x243   : > { %v3178_v41 = vpop.eup %3177 }
 0x244   : > { %v1143_v44 = vmul.f32 %v3178_v41, %v3176_v40 }
 0x246   : > { %2538 = vst [vmem:[%s2361_s27 + $0x8] sm:$0xff] %v1143_v44  ;;  %1221 = vmatmul.mubr.f32.vlgmr.msra.gmra.mrb[20].mxu0 %v1143_v44  ;;  %1292 = vmatmul.mubr.f32.vlgmr.msra.gmra.mrb[20].mxu1 %v1143_v44  ;;  %s2575_s27 = smul.u32 4294967136, %s3289_s21 }
 0x247   : > { %2805 = vmatpush1.bf16.msra.mxu0 %v3384_v21  ;;  %2837 = vmatpush1.bf16.msra.mxu1 %v3395_v27 }
 0x248   : > { %2807 = vmatprep.subr.bf16.mxu0 %v3402_v31  ;;  %2839 = vmatprep.subr.bf16.mxu1 %v3409_v35  ;;  %s2391_s28 = scalar_lea.vmem [#allocation2], %s2575_s27 }
 0x249   : > { %1401 = vmatprep.mubr.f32.mxu0 %v3299_v0  ;;  %1472 = vmatprep.mubr.f32.mxu1 %v3299_v0 }
 0x24b   : > { %2809 = vmatpush1.bf16.msra.mxu0 %v3416_v39  ;;  %2841 = vmatpush1.bf16.msra.mxu1 %v3422_v42 }
 0x24c   : > { %2811 = vmatprep.subr.bf16.mxu0 %v3424_v43  ;;  %2843 = vmatprep.subr.bf16.mxu1 %v3431_v47 }
 0x24f   : > { %2813 = vmatpush1.bf16.msra.mxu0 %v3445_v54  ;;  %2845 = vmatpush1.bf16.msra.mxu1 %v3449_v55 }
 0x250   : > { %2815 = vmatprep.subr.bf16.mxu0 %v3451_v56  ;;  %2847 = vmatprep.subr.bf16.mxu1 %v3458_v60 }
 0x253   : > { %2817 = vmatpush1.bf16.msra.mxu0 %v3472_v4  ;;  %2849 = vmatpush1.bf16.msra.mxu1 %v3476_v5 }
 0x254   : > { %2819 = vmatprep.subr.bf16.mxu0 %v3478_v6  ;;  %2851 = vmatprep.subr.bf16.mxu1 %v3485_v10 }
 0x257   : > { %2821 = vmatpush1.bf16.msra.mxu0 %v3499_v18  ;;  %2853 = vmatpush1.bf16.msra.mxu1 %v3503_v19 }
 0x258   : > { %2823 = vmatprep.subr.bf16.mxu0 %v3505_v20  ;;  %2855 = vmatprep.subr.bf16.mxu1 %v3512_v26 }
 0x25b   : > { %2825 = vmatpush1.bf16.msra.mxu0 %v3526_v36  ;;  %2857 = vmatpush1.bf16.msra.mxu1 %v3530_v37 }
 0x25c   : > { %2827 = vmatprep.subr.bf16.mxu0 %v3532_v38  ;;  %2859 = vmatprep.subr.bf16.mxu1 %v3539_v45 }
 0x25f   : > { %2829 = vmatpush1.bf16.msra.mxu0 %v3553_v53  ;;  %2861 = vmatpush1.bf16.msra.mxu1 %v3557_v57 }
 0x260   : > { %2831 = vmatprep.subr.bf16.mxu0 %v3559_v58  ;;  %2863 = vmatprep.subr.bf16.mxu1 %v3565_v62 }
 0x263   : > { %2833 = vmatpush1.bf16.msra.mxu0 %v3576_v3  ;;  %2865 = vmatpush1.bf16.msra.mxu1 %v3580_v7 }
 0x264   : > { %2867 = vmatprep.subr.bf16.mxu0 %v3379_v17  ;;  %2899 = vmatprep.subr.bf16.mxu1 %v3386_v22 }
 0x319   : > { %v1222_v46 = vpop.f32.mrb[20].mxu0  ;;  %v1293_v48 = vpop.f32.mrb[20].mxu1 }
 0x31a   : > { %v1298_v49 = vadd.f32 %v2540_v34, %v1222_v46  ;;  %v1224_v51 = vpop.f32.mrb[21].mxu0  ;;  %v1295_v16 = vpop.f32.mrb[21].mxu1  ;;  %v1300_v25 = vadd.f32 %v2542_v24, %v1293_v48 }
 0x31b   : > { %v1299_v52 = vadd.f32 %v2541_v50, %v1224_v51  ;;  %v1301_v63 = vadd.f32 %v2543_v23, %v1295_v16 }
 0x31c   : > { %v2544_v59 = vmul.f32 -1.442695, %v1298_v49  ;;  %v2551_v49 = vld [vmem:[%s2372_s9 + $0x68] sm:$0xff] }
 0x31d   : > { %v2545_v61 = vmul.f32 -1.442695, %v1299_v52  ;;  %v2546_v1 = vmul.f32 -1.442695, %v1301_v63  ;;  %v2552_v63 = vld [vmem:[%s2372_s9 + $0x70] sm:$0xff] }
 0x31e   : > { %3179 = vpow2.f32 %v2544_v59 }
 0x31f   : > { %3181 = vpow2.f32 %v2545_v61  ;;  %v2553_v61 = vld [vmem:[%s2372_s9 + $0x78] sm:$0xff] }
 0x320   : > { %3183 = vpow2.f32 %v2546_v1 }
 0x321   : > { %3185 = vtanh.f32 %v1300_v25 }
 0x328   : > { %v3180_v2 = vpop.eup %3179 }
 0x329   : > { %v3182_v8 = vpop.eup %3181  ;;  %v1305_v9 = vadd.f32 1.0, %v3180_v2 }
 0x32a   : > { %v1311_v11 = vadd.f32 1.0, %v3182_v8  ;;  %v3184_v12 = vpop.eup %3183 }
 0x32b   : > { %3187 = vrcp.f32 %v1305_v9  ;;  %v3186_v13 = vpop.eup %3185  ;;  %v1318_v29 = vadd.f32 1.0, %v3184_v12 }
 0x32c   : > { %3189 = vrcp.f32 %v1311_v11 }
 0x32d   : > { %3191 = vrcp.f32 %v1318_v29 }
 0x335   : > { %v3188_v14 = vpop.eup %3187 }
 0x336   : > { %v3190_v15 = vpop.eup %3189  ;;  %v1322_v28 = vmul.f32 %v3188_v14, %v3186_v13 }
 0x337   : > { %v1321_v30 = vmul.f32 %v3190_v15, %v3720_v33  ;;  %v3192_v40 = vpop.eup %3191  ;;  %v2550_v33 = vld [vmem:[%s2372_s9 + $0x60] sm:$0xff]  ;;  %s2505_s9 = sshll.u32 %s3359_s25, 3 }
 0x338   : > { %s390_s12 = scalar_lea.vmem %s3953_s6, %s2505_s9  ;;  %s386_s25 = scalar_lea.vmem %s3952_s5, %s2505_s9 }
 0x339   : > { %v3761_v32 = vadd.f32 %v1322_v28, %v1321_v30 }
 0x33b   : > { %3193 = vtanh.f32 %v3761_v32 }
 0x345   : > { %v3194_v41 = vpop.eup %3193 }
 0x346   : > { %v1325_v44 = vmul.f32 %v3194_v41, %v3192_v40 }
 0x348   : > { %2548 = vst [vmem:[%s2369_s7 + $0x10] sm:$0xff] %v1325_v44  ;;  %1402 = vmatmul.mubr.f32.vlgmr.msra.gmra.mrb[22].mxu0 %v1325_v44  ;;  %1473 = vmatmul.mubr.f32.vlgmr.msra.gmra.mrb[22].mxu1 %v1325_v44  ;;  %s2585_s7 = smul.u32 4294967072, %s3289_s21 }
 0x349   : > { %2869 = vmatpush1.bf16.msra.mxu0 %v3384_v21  ;;  %2901 = vmatpush1.bf16.msra.mxu1 %v3395_v27 }
 0x34a   : > { %2871 = vmatprep.subr.bf16.mxu0 %v3402_v31  ;;  %2903 = vmatprep.subr.bf16.mxu1 %v3409_v35  ;;  %s2399_s8 = scalar_lea.vmem [#allocation2], %s2585_s7 }
 0x34b   : > { %1582 = vmatprep.mubr.f32.mxu0 %v3299_v0  ;;  %1653 = vmatprep.mubr.f32.mxu1 %v3299_v0 }
 0x34d   : > { %2873 = vmatpush1.bf16.msra.mxu0 %v3416_v39  ;;  %2905 = vmatpush1.bf16.msra.mxu1 %v3422_v42 }
 0x34e   : > { %2875 = vmatprep.subr.bf16.mxu0 %v3424_v43  ;;  %2907 = vmatprep.subr.bf16.mxu1 %v3431_v47 }
 0x351   : > { %2877 = vmatpush1.bf16.msra.mxu0 %v3445_v54  ;;  %2909 = vmatpush1.bf16.msra.mxu1 %v3449_v55 }
 0x352   : > { %2879 = vmatprep.subr.bf16.mxu0 %v3451_v56  ;;  %2911 = vmatprep.subr.bf16.mxu1 %v3458_v60 }
 0x355   : > { %2881 = vmatpush1.bf16.msra.mxu0 %v3472_v4  ;;  %2913 = vmatpush1.bf16.msra.mxu1 %v3476_v5 }
 0x356   : > { %2883 = vmatprep.subr.bf16.mxu0 %v3478_v6  ;;  %2915 = vmatprep.subr.bf16.mxu1 %v3485_v10 }
 0x359   : > { %2885 = vmatpush1.bf16.msra.mxu0 %v3499_v18  ;;  %2917 = vmatpush1.bf16.msra.mxu1 %v3503_v19 }
 0x35a   : > { %2887 = vmatprep.subr.bf16.mxu0 %v3505_v20  ;;  %2919 = vmatprep.subr.bf16.mxu1 %v3512_v26 }
 0x35d   : > { %2889 = vmatpush1.bf16.msra.mxu0 %v3526_v36  ;;  %2921 = vmatpush1.bf16.msra.mxu1 %v3530_v37 }
 0x35e   : > { %2891 = vmatprep.subr.bf16.mxu0 %v3532_v38  ;;  %2923 = vmatprep.subr.bf16.mxu1 %v3539_v45 }
 0x361   : > { %2893 = vmatpush1.bf16.msra.mxu0 %v3553_v53  ;;  %2925 = vmatpush1.bf16.msra.mxu1 %v3557_v57 }
 0x362   : > { %2895 = vmatprep.subr.bf16.mxu0 %v3559_v58  ;;  %2927 = vmatprep.subr.bf16.mxu1 %v3565_v62 }
 0x365   : > { %2897 = vmatpush1.bf16.msra.mxu0 %v3576_v3  ;;  %2929 = vmatpush1.bf16.msra.mxu1 %v3580_v7 }
 0x366   : > { %2931 = vmatprep.subr.bf16.mxu0 %v3379_v17  ;;  %2963 = vmatprep.subr.bf16.mxu1 %v3386_v22 }
 0x41b   : > { %v1403_v34 = vpop.f32.mrb[22].mxu0  ;;  %v1474_v46 = vpop.f32.mrb[22].mxu1 }
 0x41c   : > { %v1479_v48 = vadd.f32 %v2550_v33, %v1403_v34  ;;  %v1405_v50 = vpop.f32.mrb[23].mxu0  ;;  %v1476_v51 = vpop.f32.mrb[23].mxu1  ;;  %v1481_v1 = vadd.f32 %v2552_v63, %v1474_v46 }
 0x41d   : > { %v1480_v16 = vadd.f32 %v2551_v49, %v1405_v50  ;;  %v1482_v23 = vadd.f32 %v2553_v61, %v1476_v51 }
 0x41e   : > { %v2554_v52 = vmul.f32 -1.442695, %v1479_v48  ;;  %v1515_v48 = vld [vmem:[%s1513_s14 + $0x8] sm:$0xff] }
 0x41f   : > { %v2555_v59 = vmul.f32 -1.442695, %v1480_v16  ;;  %v2556_v24 = vmul.f32 -1.442695, %v1482_v23  ;;  %v1516_v23 = vld [vmem:[%s1513_s14 + $0x10] sm:$0xff] }
 0x420   : > { %3195 = vpow2.f32 %v2554_v52 }
 0x421   : > { %3197 = vpow2.f32 %v2555_v59  ;;  %v1517_v59 = vld [vmem:[%s1513_s14 + $0x18] sm:$0xff] }
 0x422   : > { %3199 = vpow2.f32 %v2556_v24 }
 0x423   : > { %3201 = vtanh.f32 %v1481_v1 }
 0x42a   : > { %v3196_v25 = vpop.eup %3195 }
 0x42b   : > { %v3198_v2 = vpop.eup %3197  ;;  %v1486_v8 = vadd.f32 1.0, %v3196_v25 }
 0x42c   : > { %v1492_v9 = vadd.f32 1.0, %v3198_v2  ;;  %v3200_v11 = vpop.eup %3199 }
 0x42d   : > { %3203 = vrcp.f32 %v1486_v8  ;;  %v3202_v12 = vpop.eup %3201  ;;  %v1499_v28 = vadd.f32 1.0, %v3200_v11 }
 0x42e   : > { %3205 = vrcp.f32 %v1492_v9 }
 0x42f   : > { %3207 = vrcp.f32 %v1499_v28 }
 0x437   : > { %v3204_v13 = vpop.eup %3203 }
 0x438   : > { %v3206_v14 = vpop.eup %3205  ;;  %v1503_v15 = vmul.f32 %v3204_v13, %v3202_v12 }
 0x439   : > { %v1502_v29 = vmul.f32 %v3206_v14, %v3761_v32  ;;  %v3208_v40 = vpop.eup %3207  ;;  %v1514_v32 = vld [vmem:[%s1513_s14] sm:$0xff]  ;;  %s2403_s14 = scalar_lea.vmem %s3681_s17, %s2593_s13 }
 0x43b   : > { %v3802_v30 = vadd.f32 %v1503_v15, %v1502_v29 }
 0x43d   : > { %3209 = vtanh.f32 %v3802_v30 }
 0x447   : > { %v3210_v41 = vpop.eup %3209 }
 0x448   : > { %v1506_v44 = vmul.f32 %v3210_v41, %v3208_v40 }
 0x44a   : > { %2558 = vst [vmem:[%s2375_s11 + $0x18] sm:$0xff] %v1506_v44  ;;  %1583 = vmatmul.mubr.f32.vlgmr.msra.gmra.mrb[24].mxu0 %v1506_v44  ;;  %1654 = vmatmul.mubr.f32.vlgmr.msra.gmra.mrb[24].mxu1 %v1506_v44 }
 0x44b   : > { %2933 = vmatpush1.bf16.msra.mxu0 %v3384_v21  ;;  %2965 = vmatpush1.bf16.msra.mxu1 %v3395_v27 }
 0x44c   : > { %2935 = vmatprep.subr.bf16.mxu0 %v3402_v31  ;;  %2967 = vmatprep.subr.bf16.mxu1 %v3409_v35 }
 0x44d   : > { %1764 = vmatprep.mubr.f32.mxu0 %v3299_v0  ;;  %1835 = vmatprep.mubr.f32.mxu1 %v3299_v0 }
 0x44f   : > { %2937 = vmatpush1.bf16.msra.mxu0 %v3416_v39  ;;  %2969 = vmatpush1.bf16.msra.mxu1 %v3422_v42 }
 0x450   : > { %2939 = vmatprep.subr.bf16.mxu0 %v3424_v43  ;;  %2971 = vmatprep.subr.bf16.mxu1 %v3431_v47 }
 0x453   : > { %2941 = vmatpush1.bf16.msra.mxu0 %v3445_v54  ;;  %2973 = vmatpush1.bf16.msra.mxu1 %v3449_v55 }
 0x454   : > { %2943 = vmatprep.subr.bf16.mxu0 %v3451_v56  ;;  %2975 = vmatprep.subr.bf16.mxu1 %v3458_v60 }
 0x457   : > { %2945 = vmatpush1.bf16.msra.mxu0 %v3472_v4  ;;  %2977 = vmatpush1.bf16.msra.mxu1 %v3476_v5 }
 0x458   : > { %2947 = vmatprep.subr.bf16.mxu0 %v3478_v6  ;;  %2979 = vmatprep.subr.bf16.mxu1 %v3485_v10 }
 0x45b   : > { %2949 = vmatpush1.bf16.msra.mxu0 %v3499_v18  ;;  %2981 = vmatpush1.bf16.msra.mxu1 %v3503_v19 }
 0x45c   : > { %2951 = vmatprep.subr.bf16.mxu0 %v3505_v20  ;;  %2983 = vmatprep.subr.bf16.mxu1 %v3512_v26 }
 0x45f   : > { %2953 = vmatpush1.bf16.msra.mxu0 %v3526_v36  ;;  %2985 = vmatpush1.bf16.msra.mxu1 %v3530_v37 }
 0x460   : > { %2955 = vmatprep.subr.bf16.mxu0 %v3532_v38  ;;  %2987 = vmatprep.subr.bf16.mxu1 %v3539_v45 }
 0x463   : > { %2957 = vmatpush1.bf16.msra.mxu0 %v3553_v53  ;;  %2989 = vmatpush1.bf16.msra.mxu1 %v3557_v57 }
 0x464   : > { %2959 = vmatprep.subr.bf16.mxu0 %v3559_v58  ;;  %2991 = vmatprep.subr.bf16.mxu1 %v3565_v62 }
 0x467   : > { %2961 = vmatpush1.bf16.msra.mxu0 %v3576_v3  ;;  %2993 = vmatpush1.bf16.msra.mxu1 %v3580_v7 }
 0x468   : > { %2995 = vmatprep.subr.bf16.mxu0 %v3379_v17  ;;  %3027 = vmatprep.subr.bf16.mxu1 %v3386_v22 }
 0x51d   : > { %v1584_v33 = vpop.f32.mrb[24].mxu0  ;;  %v1655_v34 = vpop.f32.mrb[24].mxu1 }
 0x51e   : > { %v1660_v46 = vadd.f32 %v1584_v33, %v1514_v32  ;;  %v1586_v49 = vpop.f32.mrb[25].mxu0  ;;  %v1657_v50 = vpop.f32.mrb[25].mxu1  ;;  %v1662_v24 = vadd.f32 %v1655_v34, %v1516_v23 }
 0x51f   : > { %v1661_v51 = vadd.f32 %v1586_v49, %v1515_v48  ;;  %v1663_v61 = vadd.f32 %v1657_v50, %v1517_v59 }
 0x520   : > { %v2561_v16 = vmul.f32 -1.442695, %v1660_v46  ;;  %v2567_v46 = vld [vmem:[%s2383_s26 + $0xa8] sm:$0xff] }
 0x521   : > { %v2562_v52 = vmul.f32 -1.442695, %v1661_v51  ;;  %v2563_v63 = vmul.f32 -1.442695, %v1663_v61  ;;  %v2568_v61 = vld [vmem:[%s2383_s26 + $0xb0] sm:$0xff] }
 0x522   : > { %3211 = vpow2.f32 %v2561_v16 }
 0x523   : > { %3213 = vpow2.f32 %v2562_v52  ;;  %v2569_v52 = vld [vmem:[%s2383_s26 + $0xb8] sm:$0xff] }
 0x524   : > { %3215 = vpow2.f32 %v2563_v63 }
 0x525   : > { %3217 = vtanh.f32 %v1662_v24 }
 0x52c   : > { %v3212_v1 = vpop.eup %3211 }
 0x52d   : > { %v3214_v25 = vpop.eup %3213  ;;  %v1667_v2 = vadd.f32 1.0, %v3212_v1 }
 0x52e   : > { %v1673_v8 = vadd.f32 1.0, %v3214_v25  ;;  %v3216_v9 = vpop.eup %3215 }
 0x52f   : > { %3219 = vrcp.f32 %v1667_v2  ;;  %v3218_v11 = vpop.eup %3217  ;;  %v1680_v15 = vadd.f32 1.0, %v3216_v9 }
 0x530   : > { %3221 = vrcp.f32 %v1673_v8 }
 0x531   : > { %3223 = vrcp.f32 %v1680_v15 }
 0x539   : > { %v3220_v12 = vpop.eup %3219 }
 0x53a   : > { %v3222_v13 = vpop.eup %3221  ;;  %v1684_v14 = vmul.f32 %v3220_v12, %v3218_v11 }
 0x53b   : > { %v1683_v28 = vmul.f32 %v3222_v13, %v3802_v30  ;;  %v3224_v40 = vpop.eup %3223  ;;  %v2566_v30 = vld [vmem:[%s2383_s26 + $0xa0] sm:$0xff] }
 0x53d   : > { %v3845_v29 = vadd.f32 %v1684_v14, %v1683_v28 }
 0x53f   : > { %3225 = vtanh.f32 %v3845_v29 }
 0x549   : > { %v3226_v41 = vpop.eup %3225 }
 0x54a   : > { %v1687_v44 = vmul.f32 %v3226_v41, %v3224_v40 }
 0x54c   : > { %1690 = vst [vmem:[%s1689_s16] sm:$0xff] %v1687_v44  ;;  %1765 = vmatmul.mubr.f32.vlgmr.msra.gmra.mrb[26].mxu0 %v1687_v44  ;;  %1836 = vmatmul.mubr.f32.vlgmr.msra.gmra.mrb[26].mxu1 %v1687_v44 }
 0x54d   : > { %2997 = vmatpush1.bf16.msra.mxu0 %v3384_v21  ;;  %3029 = vmatpush1.bf16.msra.mxu1 %v3395_v27 }
 0x54e   : > { %2999 = vmatprep.subr.bf16.mxu0 %v3402_v31  ;;  %3031 = vmatprep.subr.bf16.mxu1 %v3409_v35 }
 0x54f   : > { %1946 = vmatprep.mubr.f32.mxu0 %v3299_v0  ;;  %2017 = vmatprep.mubr.f32.mxu1 %v3299_v0 }
 0x551   : > { %3001 = vmatpush1.bf16.msra.mxu0 %v3416_v39  ;;  %3033 = vmatpush1.bf16.msra.mxu1 %v3422_v42 }
 0x552   : > { %3003 = vmatprep.subr.bf16.mxu0 %v3424_v43  ;;  %3035 = vmatprep.subr.bf16.mxu1 %v3431_v47 }
 0x555   : > { %3005 = vmatpush1.bf16.msra.mxu0 %v3445_v54  ;;  %3037 = vmatpush1.bf16.msra.mxu1 %v3449_v55 }
 0x556   : > { %3007 = vmatprep.subr.bf16.mxu0 %v3451_v56  ;;  %3039 = vmatprep.subr.bf16.mxu1 %v3458_v60 }
 0x559   : > { %3009 = vmatpush1.bf16.msra.mxu0 %v3472_v4  ;;  %3041 = vmatpush1.bf16.msra.mxu1 %v3476_v5 }
 0x55a   : > { %3011 = vmatprep.subr.bf16.mxu0 %v3478_v6  ;;  %3043 = vmatprep.subr.bf16.mxu1 %v3485_v10 }
 0x55d   : > { %3013 = vmatpush1.bf16.msra.mxu0 %v3499_v18  ;;  %3045 = vmatpush1.bf16.msra.mxu1 %v3503_v19 }
 0x55e   : > { %3015 = vmatprep.subr.bf16.mxu0 %v3505_v20  ;;  %3047 = vmatprep.subr.bf16.mxu1 %v3512_v26 }
 0x561   : > { %3017 = vmatpush1.bf16.msra.mxu0 %v3526_v36  ;;  %3049 = vmatpush1.bf16.msra.mxu1 %v3530_v37 }
 0x562   : > { %3019 = vmatprep.subr.bf16.mxu0 %v3532_v38  ;;  %3051 = vmatprep.subr.bf16.mxu1 %v3539_v45 }
 0x565   : > { %3021 = vmatpush1.bf16.msra.mxu0 %v3553_v53  ;;  %3053 = vmatpush1.bf16.msra.mxu1 %v3557_v57 }
 0x566   : > { %3023 = vmatprep.subr.bf16.mxu0 %v3559_v58  ;;  %3055 = vmatprep.subr.bf16.mxu1 %v3565_v62 }
 0x569   : > { %3025 = vmatpush1.bf16.msra.mxu0 %v3576_v3  ;;  %3057 = vmatpush1.bf16.msra.mxu1 %v3580_v7 }
 0x56a   : > { %3059 = vmatprep.subr.bf16.mxu0 %v3379_v17  ;;  %3091 = vmatprep.subr.bf16.mxu1 %v3386_v22 }
 0x61f   : > { %v1766_v32 = vpop.f32.mrb[26].mxu0  ;;  %v1837_v33 = vpop.f32.mrb[26].mxu1 }
 0x620   : > { %v1842_v34 = vadd.f32 %v2566_v30, %v1766_v32  ;;  %v1768_v48 = vpop.f32.mrb[27].mxu0  ;;  %v1839_v49 = vpop.f32.mrb[27].mxu1  ;;  %v1844_v23 = vadd.f32 %v2568_v61, %v1837_v33  ;;  %v2587_v30 = vld [vmem:[%s2399_s8 + $0xe8] sm:$0xff] }
 0x621   : > { %v1843_v50 = vadd.f32 %v2567_v46, %v1768_v48  ;;  %v1845_v59 = vadd.f32 %v2569_v52, %v1839_v49  ;;  %v2589_v49 = vld [vmem:[%s2399_s8 + $0xf8] sm:$0xff] }
 0x622   : > { %v2570_v51 = vmul.f32 -1.442695, %v1842_v34 }
 0x623   : > { %v2571_v16 = vmul.f32 -1.442695, %v1843_v50  ;;  %v2572_v17 = vmul.f32 -1.442695, %v1845_v59 }
 0x624   : > { %3227 = vpow2.f32 %v2570_v51  ;;  %v2588_v51 = vld [vmem:[%s2399_s8 + $0xf0] sm:$0xff] }
 0x625   : > { %3229 = vpow2.f32 %v2571_v16 }
 0x626   : > { %3231 = vpow2.f32 %v2572_v17 }
 0x627   : > { %3233 = vtanh.f32 %v1844_v23 }
 0x62e   : > { %v3228_v22 = vpop.eup %3227 }
 0x62f   : > { %v3230_v63 = vpop.eup %3229  ;;  %v1849_v24 = vadd.f32 1.0, %v3228_v22 }
 0x630   : > { %v1855_v1 = vadd.f32 1.0, %v3230_v63  ;;  %v3232_v25 = vpop.eup %3231 }
 0x631   : > { %3235 = vrcp.f32 %v1849_v24  ;;  %v3234_v2 = vpop.eup %3233  ;;  %v1862_v12 = vadd.f32 1.0, %v3232_v25 }
 0x632   : > { %3237 = vrcp.f32 %v1855_v1 }
 0x633   : > { %3239 = vrcp.f32 %v1862_v12 }
 0x63b   : > { %v3236_v8 = vpop.eup %3235 }
 0x63c   : > { %v3238_v9 = vpop.eup %3237  ;;  %v1866_v11 = vmul.f32 %v3236_v8, %v3234_v2 }
 0x63d   : > { %v1865_v13 = vmul.f32 %v3238_v9, %v3845_v29  ;;  %v3240_v15 = vpop.eup %3239 }
 0x63f   : > { %v3887_v14 = vadd.f32 %v1866_v11, %v1865_v13 }
 0x641   : > { %3241 = vtanh.f32 %v3887_v14 }
 0x64b   : > { %v3242_v28 = vpop.eup %3241 }
 0x64c   : > { %v1869_v40 = vmul.f32 %v3242_v28, %v3240_v15 }
 0x64e   : > { %2574 = vst [vmem:[%s2387_s20 + $0x28] sm:$0xff] %v1869_v40  ;;  %1947 = vmatmul.mubr.f32.vlgmr.msra.gmra.mrb[28].mxu0 %v1869_v40  ;;  %2018 = vmatmul.mubr.f32.vlgmr.msra.gmra.mrb[28].mxu1 %v1869_v40 }
 0x64f   : > { %3061 = vmatpush1.bf16.msra.mxu0 %v3384_v21  ;;  %3093 = vmatpush1.bf16.msra.mxu1 %v3395_v27 }
 0x650   : > { %3063 = vmatprep.subr.bf16.mxu0 %v3402_v31  ;;  %3095 = vmatprep.subr.bf16.mxu1 %v3409_v35  ;;  %v2577_v35 = vld [vmem:[%s2391_s28 + $0xc8] sm:$0xff] }
 0x651   : > { %2128 = vmatprep.mubr.f32.mxu0 %v3299_v0  ;;  %2199 = vmatprep.mubr.f32.mxu1 %v3299_v0  ;;  %v2576_v0 = vld [vmem:[%s2391_s28 + $0xc0] sm:$0xff] }
 0x653   : > { %3065 = vmatpush1.bf16.msra.mxu0 %v3416_v39  ;;  %3097 = vmatpush1.bf16.msra.mxu1 %v3422_v42 }
 0x654   : > { %3067 = vmatprep.subr.bf16.mxu0 %v3424_v43  ;;  %3099 = vmatprep.subr.bf16.mxu1 %v3431_v47 }
 0x657   : > { %3069 = vmatpush1.bf16.msra.mxu0 %v3445_v54  ;;  %3101 = vmatpush1.bf16.msra.mxu1 %v3449_v55  ;;  %v2579_v55 = vld [vmem:[%s2391_s28 + $0xd8] sm:$0xff] }
 0x658   : > { %3071 = vmatprep.subr.bf16.mxu0 %v3451_v56  ;;  %3103 = vmatprep.subr.bf16.mxu1 %v3458_v60  ;;  %v2578_v60 = vld [vmem:[%s2391_s28 + $0xd0] sm:$0xff] }
 0x65b   : > { %3073 = vmatpush1.bf16.msra.mxu0 %v3472_v4  ;;  %3105 = vmatpush1.bf16.msra.mxu1 %v3476_v5 }
 0x65c   : > { %3075 = vmatprep.subr.bf16.mxu0 %v3478_v6  ;;  %3107 = vmatprep.subr.bf16.mxu1 %v3485_v10 }
 0x65f   : > { %3077 = vmatpush1.bf16.msra.mxu0 %v3499_v18  ;;  %3109 = vmatpush1.bf16.msra.mxu1 %v3503_v19 }
 0x660   : > { %3079 = vmatprep.subr.bf16.mxu0 %v3505_v20  ;;  %3111 = vmatprep.subr.bf16.mxu1 %v3512_v26 }
 0x663   : > { %3081 = vmatpush1.bf16.msra.mxu0 %v3526_v36  ;;  %3113 = vmatpush1.bf16.msra.mxu1 %v3530_v37 }
 0x664   : > { %3083 = vmatprep.subr.bf16.mxu0 %v3532_v38  ;;  %3115 = vmatprep.subr.bf16.mxu1 %v3539_v45 }
 0x667   : > { %3085 = vmatpush1.bf16.msra.mxu0 %v3553_v53  ;;  %3117 = vmatpush1.bf16.msra.mxu1 %v3557_v57 }
 0x668   : > { %3087 = vmatprep.subr.bf16.mxu0 %v3559_v58  ;;  %3119 = vmatprep.subr.bf16.mxu1 %v3565_v62 }
 0x66b   : > { %3089 = vmatpush1.bf16.msra.mxu0 %v3576_v3  ;;  %3121 = vmatpush1.bf16.msra.mxu1 %v3580_v7  ;;  %v2586_v7 = vld [vmem:[%s2399_s8 + $0xe0] sm:$0xff] }
 0x721   : > { %v1948_v21 = vpop.f32.mrb[28].mxu0  ;;  %v2019_v27 = vpop.f32.mrb[28].mxu1 }
 0x722   : > { %v2024_v31 = vadd.f32 %v2576_v0, %v1948_v21  ;;  %v1950_v39 = vpop.f32.mrb[29].mxu0  ;;  %v2021_v42 = vpop.f32.mrb[29].mxu1  ;;  %v2026_v5 = vadd.f32 %v2578_v60, %v2019_v27 }
 0x723   : > { %v2025_v43 = vadd.f32 %v2577_v35, %v1950_v39  ;;  %v2027_v56 = vadd.f32 %v2579_v55, %v2021_v42 }
 0x724   : > { %v2580_v47 = vmul.f32 -1.442695, %v2024_v31 }
 0x725   : > { %v2581_v54 = vmul.f32 -1.442695, %v2025_v43  ;;  %v2582_v4 = vmul.f32 -1.442695, %v2027_v56 }
 0x726   : > { %3243 = vpow2.f32 %v2580_v47 }
 0x727   : > { %3245 = vpow2.f32 %v2581_v54 }
 0x728   : > { %3247 = vpow2.f32 %v2582_v4 }
 0x729   : > { %3249 = vtanh.f32 %v2026_v5 }
 0x730   : > { %v3244_v6 = vpop.eup %3243 }
 0x731   : > { %v3246_v10 = vpop.eup %3245  ;;  %v2031_v18 = vadd.f32 1.0, %v3244_v6 }
 0x732   : > { %v2037_v19 = vadd.f32 1.0, %v3246_v10  ;;  %v3248_v20 = vpop.eup %3247 }
 0x733   : > { %3251 = vrcp.f32 %v2031_v18  ;;  %v3250_v26 = vpop.eup %3249  ;;  %v2044_v45 = vadd.f32 1.0, %v3248_v20 }
 0x734   : > { %3253 = vrcp.f32 %v2037_v19 }
 0x735   : > { %3255 = vrcp.f32 %v2044_v45 }
 0x73d   : > { %v3252_v36 = vpop.eup %3251 }
 0x73e   : > { %v3254_v37 = vpop.eup %3253  ;;  %v2048_v38 = vmul.f32 %v3252_v36, %v3250_v26 }
 0x73f   : > { %v2047_v53 = vmul.f32 %v3254_v37, %v3887_v14  ;;  %v3256_v58 = vpop.eup %3255 }
 0x741   : > { %v2049_v57 = vadd.f32 %v2048_v38, %v2047_v53 }
 0x743   : > { %3257 = vtanh.f32 %v2049_v57 }
 0x74d   : > { %v3258_v62 = vpop.eup %3257 }
 0x74e   : > { %v2051_v3 = vmul.f32 %v3258_v62, %v3256_v58 }
 0x750   : > { %2584 = vst [vmem:[%s2395_s30 + $0x30] sm:$0xff] %v2051_v3  ;;  %2129 = vmatmul.mubr.f32.vlgmr.msra.gmra.mrb[30].mxu0 %v2051_v3  ;;  %2200 = vmatmul.mubr.f32.vlgmr.msra.gmra.mrb[30].mxu1 %v2051_v3 }
 0x823   : > { %v2130_v29 = vpop.f32.mrb[30].mxu0  ;;  %v2201_v41 = vpop.f32.mrb[30].mxu1 }
 0x824   : > { %v2206_v44 = vadd.f32 %v2586_v7, %v2130_v29  ;;  %v2132_v32 = vpop.f32.mrb[31].mxu0  ;;  %v2203_v33 = vpop.f32.mrb[31].mxu1  ;;  %v2208_v52 = vadd.f32 %v2588_v51, %v2201_v41 }
 0x825   : > { %v2207_v34 = vadd.f32 %v2587_v30, %v2132_v32  ;;  %v2209_v50 = vadd.f32 %v2589_v49, %v2203_v33 }
 0x826   : > { %v2590_v46 = vmul.f32 -1.442695, %v2206_v44 }
 0x827   : > { %v2591_v48 = vmul.f32 -1.442695, %v2207_v34  ;;  %v2592_v16 = vmul.f32 -1.442695, %v2209_v50 }
 0x828   : > { %3259 = vpow2.f32 %v2590_v46 }
 0x829   : > { %3261 = vpow2.f32 %v2591_v48 }
 0x82a   : > { %3263 = vpow2.f32 %v2592_v16 }
 0x82b   : > { %3265 = vtanh.f32 %v2208_v52 }
 0x832   : > { %v3260_v59 = vpop.eup %3259 }
 0x833   : > { %v3262_v61 = vpop.eup %3261  ;;  %v2213_v17 = vadd.f32 1.0, %v3260_v59 }
 0x834   : > { %v2219_v23 = vadd.f32 1.0, %v3262_v61  ;;  %v3264_v22 = vpop.eup %3263 }
 0x835   : > { %3267 = vrcp.f32 %v2213_v17  ;;  %v3266_v63 = vpop.eup %3265  ;;  %v2226_v2 = vadd.f32 1.0, %v3264_v22 }
 0x836   : > { %3269 = vrcp.f32 %v2219_v23 }
 0x837   : > { %3271 = vrcp.f32 %v2226_v2 }
 0x83f   : > { %v3268_v24 = vpop.eup %3267 }
 0x840   : > { %v3270_v1 = vpop.eup %3269  ;;  %v2230_v25 = vmul.f32 %v3268_v24, %v3266_v63 }
 0x841   : > { %v2229_v8 = vmul.f32 %v3270_v1, %v2049_v57  ;;  %v3272_v11 = vpop.eup %3271 }
 0x843   : > { %v2231_v9 = vadd.f32 %v2230_v25, %v2229_v8 }
 0x845   : > { %3273 = vtanh.f32 %v2231_v9  ;;  %2243 = vst [vmem:[%s390_s12] sm:$0xff] %v2231_v9 }
 0x84f   : > { %v3274_v12 = vpop.eup %3273 }
 0x850   : > { %v2233_v13 = vmul.f32 %v3274_v12, %v3272_v11 }
 0x852   : > { %2594 = vst [vmem:[%s2403_s14 + $0x38] sm:$0xff] %v2233_v13  ;;  %2242 = vst [vmem:[%s386_s25] sm:$0xff] %v2233_v13 }
 0x853 PF: > { %s17_s23 = sadd.s32 1, %s3297_s23   ;;  %s3954_s21 = smov %s3293_s22 }
 0x854   : > { %p14_p5 = scmp.ge.s32.totalorder %s17_s23, 4   ;;  %s3955_s22 = smov %s3957_s24 }
 0x856   :  { %16 = sbr.rel (!%p14_p5) target bundleno = 2 (0x2), region = 123 }

</bundles_post_ra>
